<compile_context>
chip_gen: v7x
topology: tpu7x:2x2x1
jax: 0.10.0
libtpu: 0.0.40
codegen_flags: <defaults>
</compile_context>

<pallas_src>
import jax
import jax.numpy as jnp
from jax.experimental import pallas as pl
from jax.experimental.pallas import tpu as pltpu

IN_F, H1_F, H2_F, OUT_F = 4, 128, 256, 4


def bezier_mlp_kernel(x_ref, w1_ref, b1_ref, w2_ref, b2_ref, w3_ref, b3_ref, o_ref):
    # x_ref: (4, TB) f32 — batch on lanes (lane-dense loads and stores).
    w1 = w1_ref[...]                              # (128, 4) f32, PyTorch (out, in)

    # ---- Layer 1 on the VPU: K=4 contraction unrolled as broadcast FMAs ----
    # (Per review: only move this onto the MXU if a bundle dump shows the VALU
    #  saturated with the MXU idle — roughly neutral on v5e.)
    h1 = b1_ref[...]                              # (128, 1) -> broadcasts along lanes
    for k in range(IN_F):
        xk = x_ref[pl.ds(k, 1), :]                # (1, TB) row straight from VMEM
        h1 = h1 + w1[:, k:k + 1] * xk             # (128,1)*(1,TB) -> (128,TB) f32
    # Fused ReLU + bf16 cast: only the bf16 copy of h1 materializes in VMEM.
    h1 = jnp.maximum(h1, 0.0).astype(jnp.bfloat16)            # (128, TB) bf16

    # ---- Layer 2 on the MXU (bf16 operands, f32 accumulation) ----
    h2 = jnp.dot(w2_ref[...], h1, preferred_element_type=jnp.float32)   # (256, TB) f32
    h2 = jnp.maximum(h2 + b2_ref[...], 0.0).astype(jnp.bfloat16)        # (256, TB) bf16

    # ---- Layer 3 on the MXU, also bf16 (single pass; h2 already carries bf16
    #      error from layer 2, so an f32 pass here buys no accuracy) ----
    out = jnp.dot(w3_ref[...], h2, preferred_element_type=jnp.float32)  # (4, TB) f32
    o_ref[...] = (out + b3_ref[...]).astype(o_ref.dtype)      # lane-dense store


def _round_up(n, m):
    return (n + m - 1) // m * m


def _choose_tile(batch, tb_max=4096):
    """Batch tile: multiple of 256, <=4096 (v5e VMEM), nb>=2 when B>256 (v7x)."""
    tb = max(256, min(_round_up(tb_max, 256), 4096))
    tb = min(tb, _round_up(batch, 256))           # no bigger than needed
    if batch > 256:
        # Keep at least 2 grid steps so "parallel" shards across both v7x TCs.
        tb = min(tb, _round_up(batch, 512) // 2)
    return max(256, _round_up(tb, 256))


def bezier_ai_forward_T(xt, params, *, tb_max=4096):
    """Fused forward pass on feature-major activations.

    xt: (4, B) float32 (batch on the minor axis). Returns (4, B) float32.
    No wrapper-side pad/transpose passes: edge blocks are OOB-masked.
    """
    w1, b1, w2, b2, w3, b3 = params               # w*: (out, in), b*: (out,)
    B = xt.shape[1]
    tb = _choose_tile(B, tb_max)
    nb = pl.cdiv(B, tb)

    w2b = w2.astype(jnp.bfloat16)
    w3b = w3.astype(jnp.bfloat16)
    b1c = b1.reshape(H1_F, 1)
    b2c = b2.reshape(H2_F, 1)
    b3c = b3.reshape(OUT_F, 1)

    flops = 2 * B * (IN_F * H1_F + H1_F * H2_F + H2_F * OUT_F)
    bytes_accessed = (B * (IN_F + OUT_F) * 4
                      + IN_F * H1_F * 4
                      + (H1_F * H2_F + H2_F * OUT_F) * 2
                      + (H1_F + H2_F + OUT_F) * 4)

    return pl.pallas_call(
        bezier_mlp_kernel,
        out_shape=jax.ShapeDtypeStruct((OUT_F, B), jnp.float32),
        grid_spec=pltpu.PrefetchScalarGridSpec(
            num_scalar_prefetch=0,
            grid=(nb,),
            in_specs=[
                pl.BlockSpec((IN_F, tb), lambda i: (0, i)),       # x^T tile
                pl.BlockSpec((H1_F, IN_F), lambda i: (0, 0)),     # w1 (resident)
                pl.BlockSpec((H1_F, 1), lambda i: (0, 0)),        # b1
                pl.BlockSpec((H2_F, H1_F), lambda i: (0, 0)),     # w2 bf16 (resident)
                pl.BlockSpec((H2_F, 1), lambda i: (0, 0)),        # b2
                pl.BlockSpec((OUT_F, H2_F), lambda i: (0, 0)),    # w3 bf16 (resident)
                pl.BlockSpec((OUT_F, 1), lambda i: (0, 0)),       # b3
            ],
            out_specs=pl.BlockSpec((OUT_F, tb), lambda i: (0, i)),
        ),
        compiler_params=pltpu.CompilerParams(
            dimension_semantics=("parallel",),
            vmem_limit_bytes=32 * 1024 * 1024,
        ),
        cost_estimate=pl.CostEstimate(
            flops=flops, transcendentals=0, bytes_accessed=bytes_accessed),
    )(xt, w1, b1c, w2b, b2c, w3b, b3c)


def bezier_ai_forward(x, params, *, tb_max=4096):
    """PyTorch-layout entry point: x (B, 4) float32 -> (B, 4) float32.

    Callers that can keep activations feature-major end-to-end should use
    bezier_ai_forward_T directly and skip these two small transpose launches.
    """
    return bezier_ai_forward_T(x.T, params, tb_max=tb_max).T


def init_params(key):
    """Deterministic parameter init mirroring nn.Linear (PyTorch (out,in) layout)."""
    ks = jax.random.split(key, 6)

    def linear(kw, kb, in_f, out_f):
        bound = 1.0 / jnp.sqrt(in_f)
        w = jax.random.uniform(kw, (out_f, in_f), jnp.float32, -bound, bound)
        b = jax.random.uniform(kb, (out_f,), jnp.float32, -bound, bound)
        return w, b

    w1, b1 = linear(ks[0], ks[1], IN_F, H1_F)
    w2, b2 = linear(ks[2], ks[3], H1_F, H2_F)
    w3, b3 = linear(ks[4], ks[5], H2_F, OUT_F)
    return (w1, b1, w2, b2, w3, b3)


def reference_forward(x, params):
    w1, b1, w2, b2, w3, b3 = params
    h1 = jnp.maximum(x @ w1.T + b1, 0.0)
    h2 = jnp.maximum(h1 @ w2.T + b2, 0.0)
    return h2 @ w3.T + b3


if __name__ == "__main__":
    key = jax.random.PRNGKey(0)
    k_params, k_x = jax.random.split(key)

    params = init_params(k_params)
    # B=260: not a multiple of the 256-wide tile -> exercises a 2-step grid
    # (tb=256, nb=2 for v7x dual-TC) with a masked edge block, resident
    # weights, and lane-dense I/O — no wrapper pad/slice pass.
    B = 260
    x = jax.random.normal(k_x, (B, IN_F), dtype=jnp.float32)

    out = bezier_ai_forward(x, params)
    out = jax.block_until_ready(out)

    ref = reference_forward(x, params)
    assert out.shape == (B, OUT_F)
    # Tolerance loosened vs. pure-f32: layers 2 and 3 use bf16 operands
    # (f32 MXU accumulation).
    assert jnp.allclose(out, ref, atol=2e-2, rtol=2e-2), float(
        jnp.max(jnp.abs(out - ref)))

    print("KERNEL_OK")
</pallas_src>

<mosaic_0001>
module attributes {stable_mosaic.version = 11 : i64} {
  func.func @bezier_mlp_kernel(%arg0: i32, %arg1: memref<4x256xf32, #tpu.memory_space<vmem>>, %arg2: memref<128x4xf32, #tpu.memory_space<vmem>>, %arg3: memref<128x1xf32, #tpu.memory_space<vmem>>, %arg4: memref<256x128xbf16, #tpu.memory_space<vmem>>, %arg5: memref<256x1xf32, #tpu.memory_space<vmem>>, %arg6: memref<4x256xbf16, #tpu.memory_space<vmem>>, %arg7: memref<4x1xf32, #tpu.memory_space<vmem>>, %arg8: memref<4x256xf32, #tpu.memory_space<vmem>>) attributes {dimension_semantics = [#tpu.dimension_semantics<parallel>], iteration_bounds = array<i64: 2>, scalar_prefetch = 0 : i64, scratch_operands = 0 : i64, tpu.core_type = #tpu.core_type<tc>, window_params = [{transform_indices = @transform_0, window_bounds = array<i64: 4, 256>}, {pipeline_mode = #tpu.pipeline_mode<synchronous>, transform_indices = @transform_1, window_bounds = array<i64: 128, 4>}, {pipeline_mode = #tpu.pipeline_mode<synchronous>, transform_indices = @transform_2, window_bounds = array<i64: 128, 1>}, {pipeline_mode = #tpu.pipeline_mode<synchronous>, transform_indices = @transform_3, window_bounds = array<i64: 256, 128>}, {pipeline_mode = #tpu.pipeline_mode<synchronous>, transform_indices = @transform_4, window_bounds = array<i64: 256, 1>}, {pipeline_mode = #tpu.pipeline_mode<synchronous>, transform_indices = @transform_5, window_bounds = array<i64: 4, 256>}, {pipeline_mode = #tpu.pipeline_mode<synchronous>, transform_indices = @transform_6, window_bounds = array<i64: 4, 1>}, {transform_indices = @transform_7, window_bounds = array<i64: 4, 256>}]} {
    %c0 = arith.constant 0 : index
    %c0_0 = arith.constant 0 : index
    %0 = vector.load %arg2[%c0, %c0_0] : memref<128x4xf32, #tpu.memory_space<vmem>>, vector<128x4xf32>
    %c0_1 = arith.constant 0 : index
    %c0_2 = arith.constant 0 : index
    %1 = vector.load %arg3[%c0_1, %c0_2] : memref<128x1xf32, #tpu.memory_space<vmem>>, vector<128x1xf32>
    %c0_3 = arith.constant 0 : index
    %c0_4 = arith.constant 0 : index
    %2 = vector.load %arg1[%c0_3, %c0_4] : memref<4x256xf32, #tpu.memory_space<vmem>>, vector<1x256xf32>
    %3 = vector.extract_strided_slice %0 {offsets = [0, 0], sizes = [128, 1], strides = [1, 1]} : vector<128x4xf32> to vector<128x1xf32>
    %4 = vector.broadcast %3 : vector<128x1xf32> to vector<128x256xf32>
    %5 = vector.broadcast %2 : vector<1x256xf32> to vector<128x256xf32>
    %6 = arith.mulf %4, %5 : vector<128x256xf32>
    %7 = vector.broadcast %1 : vector<128x1xf32> to vector<128x256xf32>
    %8 = arith.addf %7, %6 : vector<128x256xf32>
    %c1 = arith.constant 1 : index
    %c0_5 = arith.constant 0 : index
    %9 = vector.load %arg1[%c1, %c0_5] : memref<4x256xf32, #tpu.memory_space<vmem>>, vector<1x256xf32>
    %10 = vector.extract_strided_slice %0 {offsets = [0, 1], sizes = [128, 1], strides = [1, 1]} : vector<128x4xf32> to vector<128x1xf32>
    %11 = vector.broadcast %10 : vector<128x1xf32> to vector<128x256xf32>
    %12 = vector.broadcast %9 : vector<1x256xf32> to vector<128x256xf32>
    %13 = arith.mulf %11, %12 : vector<128x256xf32>
    %14 = arith.addf %8, %13 : vector<128x256xf32>
    %c2 = arith.constant 2 : index
    %c0_6 = arith.constant 0 : index
    %15 = vector.load %arg1[%c2, %c0_6] : memref<4x256xf32, #tpu.memory_space<vmem>>, vector<1x256xf32>
    %16 = vector.extract_strided_slice %0 {offsets = [0, 2], sizes = [128, 1], strides = [1, 1]} : vector<128x4xf32> to vector<128x1xf32>
    %17 = vector.broadcast %16 : vector<128x1xf32> to vector<128x256xf32>
    %18 = vector.broadcast %15 : vector<1x256xf32> to vector<128x256xf32>
    %19 = arith.mulf %17, %18 : vector<128x256xf32>
    %20 = arith.addf %14, %19 : vector<128x256xf32>
    %c3 = arith.constant 3 : index
    %c0_7 = arith.constant 0 : index
    %21 = vector.load %arg1[%c3, %c0_7] : memref<4x256xf32, #tpu.memory_space<vmem>>, vector<1x256xf32>
    %22 = vector.extract_strided_slice %0 {offsets = [0, 3], sizes = [128, 1], strides = [1, 1]} : vector<128x4xf32> to vector<128x1xf32>
    %23 = vector.broadcast %22 : vector<128x1xf32> to vector<128x256xf32>
    %24 = vector.broadcast %21 : vector<1x256xf32> to vector<128x256xf32>
    %25 = arith.mulf %23, %24 : vector<128x256xf32>
    %26 = arith.addf %20, %25 : vector<128x256xf32>
    %cst = arith.constant 0.000000e+00 : f32
    %27 = vector.broadcast %cst : f32 to vector<128x256xf32>
    %28 = arith.maximumf %26, %27 : vector<128x256xf32>
    %29 = arith.truncf %28 : vector<128x256xf32> to vector<128x256xbf16>
    %c0_8 = arith.constant 0 : index
    %c0_9 = arith.constant 0 : index
    %30 = vector.load %arg4[%c0_8, %c0_9] : memref<256x128xbf16, #tpu.memory_space<vmem>>, vector<256x128xbf16>
    %cst_10 = arith.constant dense<0.000000e+00> : vector<256x256xf32>
    %31 = tpu.matmul %30, %29, %cst_10 {dimension_numbers = #tpu.dot_dimension_numbers<[1], [0], [0], [1], [0, 0, 1, 1], [], []>} : vector<256x128xbf16>, vector<128x256xbf16>, vector<256x256xf32> -> vector<256x256xf32>
    %c0_11 = arith.constant 0 : index
    %c0_12 = arith.constant 0 : index
    %32 = vector.load %arg5[%c0_11, %c0_12] : memref<256x1xf32, #tpu.memory_space<vmem>>, vector<256x1xf32>
    %33 = vector.broadcast %32 : vector<256x1xf32> to vector<256x256xf32>
    %34 = arith.addf %31, %33 : vector<256x256xf32>
    %cst_13 = arith.constant 0.000000e+00 : f32
    %35 = vector.broadcast %cst_13 : f32 to vector<256x256xf32>
    %36 = arith.maximumf %34, %35 : vector<256x256xf32>
    %37 = arith.truncf %36 : vector<256x256xf32> to vector<256x256xbf16>
    %c0_14 = arith.constant 0 : index
    %c0_15 = arith.constant 0 : index
    %38 = vector.load %arg6[%c0_14, %c0_15] : memref<4x256xbf16, #tpu.memory_space<vmem>>, vector<4x256xbf16>
    %cst_16 = arith.constant dense<0.000000e+00> : vector<4x256xf32>
    %39 = tpu.matmul %38, %37, %cst_16 {dimension_numbers = #tpu.dot_dimension_numbers<[1], [0], [0], [1], [0, 0, 1, 1], [], []>} : vector<4x256xbf16>, vector<256x256xbf16>, vector<4x256xf32> -> vector<4x256xf32>
    %c0_17 = arith.constant 0 : index
    %c0_18 = arith.constant 0 : index
    %40 = vector.load %arg7[%c0_17, %c0_18] : memref<4x1xf32, #tpu.memory_space<vmem>>, vector<4x1xf32>
    %41 = vector.broadcast %40 : vector<4x1xf32> to vector<4x256xf32>
    %42 = arith.addf %39, %41 : vector<4x256xf32>
    %c0_19 = arith.constant 0 : index
    %c0_20 = arith.constant 0 : index
    %43 = vector.load %arg8[%c0_19, %c0_20] : memref<4x256xf32, #tpu.memory_space<vmem>>, vector<4x256xf32>
    tpu.vector_store %arg8[%c0_19, %c0_20], %42 {strides = array<i32>} : memref<4x256xf32, #tpu.memory_space<vmem>>, vector<4x256xf32>,
    return
  }
  func.func @transform_0(%arg0: i32) -> (i32, i32) {
    %c0_i32 = arith.constant 0 : i32
    %c0_i32_0 = arith.constant 0 : i32
    return %c0_i32, %arg0 : i32, i32
  }
  func.func @transform_1(%arg0: i32) -> (i32, i32) {
    %c0_i32 = arith.constant 0 : i32
    %c0_i32_0 = arith.constant 0 : i32
    %c0_i32_1 = arith.constant 0 : i32
    return %c0_i32, %c0_i32_0 : i32, i32
  }
  func.func @transform_2(%arg0: i32) -> (i32, i32) {
    %c0_i32 = arith.constant 0 : i32
    %c0_i32_0 = arith.constant 0 : i32
    %c0_i32_1 = arith.constant 0 : i32
    return %c0_i32, %c0_i32_0 : i32, i32
  }
  func.func @transform_3(%arg0: i32) -> (i32, i32) {
    %c0_i32 = arith.constant 0 : i32
    %c0_i32_0 = arith.constant 0 : i32
    %c0_i32_1 = arith.constant 0 : i32
    return %c0_i32, %c0_i32_0 : i32, i32
  }
  func.func @transform_4(%arg0: i32) -> (i32, i32) {
    %c0_i32 = arith.constant 0 : i32
    %c0_i32_0 = arith.constant 0 : i32
    %c0_i32_1 = arith.constant 0 : i32
    return %c0_i32, %c0_i32_0 : i32, i32
  }
  func.func @transform_5(%arg0: i32) -> (i32, i32) {
    %c0_i32 = arith.constant 0 : i32
    %c0_i32_0 = arith.constant 0 : i32
    %c0_i32_1 = arith.constant 0 : i32
    return %c0_i32, %c0_i32_0 : i32, i32
  }
  func.func @transform_6(%arg0: i32) -> (i32, i32) {
    %c0_i32 = arith.constant 0 : i32
    %c0_i32_0 = arith.constant 0 : i32
    %c0_i32_1 = arith.constant 0 : i32
    return %c0_i32, %c0_i32_0 : i32, i32
  }
  func.func @transform_7(%arg0: i32) -> (i32, i32) {
    %c0_i32 = arith.constant 0 : i32
    %c0_i32_0 = arith.constant 0 : i32
    return %c0_i32, %arg0 : i32, i32
  }
}

</mosaic_0001>

<bundles_post_ra>
// kernel: tpu_custom_call.1
= control target key start
LH: loop header
LB: loop body
LE: loop exit
PB: predicated region body
PF: predicated region fallthrough
CT: control target
= control target key end

     0   :  { %12 = vsyncpa [#allocation3], 0  ;;  %s2855_s0 = inlined_call_operand.vmem [shape: f32[4,260], index: 0, kind: input, shape index: {}]   ;;  %s2856_s1 = inlined_call_operand.vmem [shape: f32[128,4], index: 1, kind: input, shape index: {}]   ;;  %s2857_s2 = inlined_call_operand.vmem [shape: f32[128,1], index: 2, kind: input, shape index: {}]   ;;  %s2858_s3 = inlined_call_operand.vmem [shape: bf16[256,128], index: 3, kind: input, shape index: {}]   ;;  %s2859_s4 = inlined_call_operand.vmem [shape: f32[256,1], index: 4, kind: input, shape index: {}]   ;;  %s2860_s5 = inlined_call_operand.vmem [shape: bf16[4,256], index: 5, kind: input, shape index: {}]   ;;  %s2861_s6 = inlined_call_operand.vmem [shape: f32[4,1], index: 6, kind: input, shape index: {}]   ;;  %s2862_s7 = inlined_call_operand.hbm [shape: f32[4,260], index: 7, kind: output, shape index: {}]  }
   0x1   :  { %14 = vsyncpa [#allocation3 + $0x1], 0  ;;  %s2046_s24 = smov 0   ;;  %s2048_s25 = smov 0  }
   0x2   :  { %s2050_s26 = smov 0   ;;  %s2052_s27 = smov 0  }
   0x3 LB: > { %s2067_s28 = sadd.s32 4294967295, %s1999_s27   ;;  %s1797_s29 = sadd.s32 4294967294, %s1999_s27   ;;  %s1999_s27 = sphi %s2052_s27, %s2891_s27   ;;  %s1995_s26 = sphi %s2050_s26, %s2890_s26   ;;  %s1991_s25 = sphi %s2048_s25, %s2889_s25   ;;  %s1987_s24 = sphi %s2046_s24, %s2888_s24  }
   0x4   : > { %s2071_s30 = sadd.s32 1, %s1999_s27   ;;  %s179_s8 = sadd.s32 1, %s1995_s26 }
   0x5   : > { %s176_s9 = ssub.s32 %s1999_s27, %s2071_s30  ;;  %p189_p0 = scmp.ne.s32.totalorder %s1995_s26, %s1991_s25 }
   0x6   : > { %p177_p1 = scmp.eq.s32.totalorder %s176_s9, 0  ;;  %p190_p2 = scmp.eq.s32.totalorder %s2067_s28, 1 }
   0x7   : > { %p195_p3 = scmp.ne.s32.totalorder %s1991_s25, %s1987_s24  ;;  %p196_p4 = scmp.eq.s32.totalorder %s1797_s29, 1 }
   0x8   : > { %s2082_s10 = scalar_select %p177_p1, %s1995_s26, %s179_s8  }
   0x9   : > { %p2084_p5 = por %p190_p2, %p189_p0  ;;  %p2088_p6 = por %p196_p4, %p195_p3 }
   0xa   : > { %p1800_p7 = scmp.ge.s32.totalorder %s1999_s27, 1  ;;  %p249_p8 = scmp.lt.s32.totalorder %s1999_s27, 3 }
   0xc   : > { %p250_p9 = pnand %p1800_p7, %p249_p8 }
   0xe   : > { %253 = sbr.rel (%p250_p9) target bundleno = 991 (0x3df), region = 48 }
  0x15   : > { %v321_v0 = vld [vmem:[%s2857_s2] sm:$0xff]  ;;  %v2100_v1 = vld [vmem:[%s2856_s1 + $0x10] sm:$0xff]  ;;  %v2868_v2 = vmov 2   ;;  %v2866_v3 = vmov 0   ;;  %v322_v4 = vld [vmem:[%s2857_s2 + $0x8] sm:$0xff]  ;;  %v2865_v8 = vmov 1   ;;  %v419_v61 = vlaneseq }
  0x16   : > { %1884 = vset.pattern.permute.xlu0 %v2868_v2  ;;  %1876 = vset.pattern.permute.xlu1 %v2866_v3  ;;  %v2111_v5 = vld [vmem:[%s2856_s1 + $0x30] sm:$0xff]  ;;  %v2123_v7 = vld [vmem:[%s2856_s1 + $0x8] sm:$0xff]  ;;  %v305_v9 = vld [vmem:[%s2856_s1] sm:$0xff]  ;;  %v2863_v16 = vmov 3   ;;  %s2313_s17 = sshll.u32 %s2067_s28, 1  ;;  %s282_s23 = sand.u32 1, %s1991_s25  }
  0x17   : > { %463 = vperm.xlu1 %1876, %v321_v0   ;;  %725 = vperm.xlu0 %1884, %v2100_v1   ;;  %v2118_v6 = vld [vmem:[%s2856_s1 + $0x50] sm:$0xff]  ;;  %v308_v10 = vld [vmem:[%s2856_s1 + $0x18] sm:$0xff]  ;;  %v326_v13 = vld [vmem:[%s2857_s2 + $0x28] sm:$0xff]  ;;  %p290_p10 = scmp.lt.s32.totalorder %s2313_s17, 2  ;;  %v420_v0 = vshrl.u32 %v419_v61, 7  ;;  %s2801_s9 = scalar_lea.sflag [#allocation3], %s282_s23 }
  0x18   : > { %1396 = vmatprep.mubr.bf16.mxu0 %v2866_v3  ;;  %v323_v11 = vld [vmem:[%s2857_s2 + $0x10] sm:$0xff]  ;;  %v324_v12 = vld [vmem:[%s2857_s2 + $0x18] sm:$0xff]  ;;  %v330_v17 = vld [vmem:[%s2857_s2 + $0x48] sm:$0xff]  ;;  %s1726_s13 = ssub.s32 (%p2084_p5), 3, %s2313_s17 }
  0x19   : > { %v2153_v14 = vld [vmem:[%s2856_s1 + $0x38] sm:$0xff]  ;;  %v327_v15 = vld [vmem:[%s2857_s2 + $0x30] sm:$0xff]  ;;  %v309_v18 = vld [vmem:[%s2856_s1 + $0x20] sm:$0xff]  ;;  %s291_s20 = scalar_select %p290_p10, %s2313_s17, 2 }
  0x1a   : > { %v2171_v19 = vld [vmem:[%s2856_s1 + $0x58] sm:$0xff]  ;;  %v310_v20 = vld [vmem:[%s2856_s1 + $0x28] sm:$0xff]  ;;  %v331_v21 = vld [vmem:[%s2857_s2 + $0x50] sm:$0xff]  ;;  %p1727_p11 = scmp.lt.s32.totalorder (%p2084_p5), %s1726_s13, 2 }
  0x1b   : > { %468 = vperm.xlu1 %1876, %v322_v4   ;;  %741 = vperm.xlu0 %1884, %v2111_v5   ;;  %v334_v22 = vld [vmem:[%s2857_s2 + $0x68] sm:$0xff]  ;;  %v2187_v23 = vld [vmem:[%s2856_s1 + $0x78] sm:$0xff]  ;;  %v325_v24 = vld [vmem:[%s2857_s2 + $0x20] sm:$0xff]  ;;  %s1803_s21 = sshll.u32 %s291_s20, 2 }
  0x1c   : > { %v335_v25 = vld [vmem:[%s2857_s2 + $0x70] sm:$0xff]  ;;  %v328_v27 = vld [vmem:[%s2857_s2 + $0x38] sm:$0xff]  ;;  %v313_v28 = vld [vmem:[%s2856_s1 + $0x40] sm:$0xff]  ;;  %s293_s29 = scalar_lea.vmem %s2855_s0, %s1803_s21 }
  0x1d   : > { %v2208_v26 = vld [vmem:[%s2856_s1 + $0x70] sm:$0xff]  ;;  %v314_v29 = vld [vmem:[%s2856_s1 + $0x48] sm:$0xff]  ;;  %v329_v31 = vld [vmem:[%s2857_s2 + $0x40] sm:$0xff] }
  0x1e   : > { %v2234_v30 = vld [vmem:[%s2856_s1 + $0x68] sm:$0xff]  ;;  %v332_v43 = vld [vmem:[%s2857_s2 + $0x58] sm:$0xff]  ;;  %v2297_v51 = vld [vmem:[%s2856_s1 + $0x60] sm:$0xff] }
  0x1f   : > { %1877 = vset.pattern.permute.xlu1 %v2865_v8  ;;  %757 = vperm.xlu0 %1884, %v2118_v6   ;;  %v333_v58 = vld [vmem:[%s2857_s2 + $0x60] sm:$0xff] }
  0x20   : > { %580 = vperm.xlu1 %1877, %v2123_v7  }
  0x23   : > { %1905 = vset.pattern.permute.xlu0 %v2866_v3 }
  0x24   : > { %1878 = vset.pattern.permute.xlu1 %v2866_v3  ;;  %340 = vperm.xlu0 %1905, %v305_v9  }
  0x25   : > { %350 = vperm.xlu1 %1878, %v2100_v1  }
  0x28   : > { %345 = vperm.xlu0 %1905, %v2123_v7  }
  0x29   : > { %1879 = vset.pattern.permute.xlu1 %v2868_v2 }
  0x2a   : > { %717 = vperm.xlu1 %1879, %v305_v9  }
  0x2c   : > { %355 = vperm.xlu0 %1905, %v308_v10  }
  0x2e   : > { %721 = vperm.xlu1 %1879, %v2123_v7  }
  0x30   : > { %473 = vperm.xlu0 %1905, %v323_v11  }
  0x32   : > { %1880 = vset.pattern.permute.xlu1 %v2866_v3 }
  0x33   : > { %478 = vperm.xlu1 %1880, %v324_v12  }
  0x34   : > { %488 = vperm.xlu0 %1905, %v326_v13   ;;  %v1805_v13 = vld [vmem:[%s293_s29 + $0x2] ss:$4 sm:$0x3] }
  0x37   : > { %1881 = vset.pattern.permute.xlu1 %v2865_v8 }
  0x38   : > { %375 = vperm.xlu0 %1905, %v2153_v14   ;;  %588 = vperm.xlu1 %1881, %v308_v10  }
  0x3c   : > { %493 = vperm.xlu0 %1905, %v327_v15   ;;  %1882 = vset.pattern.permute.xlu1 %v2863_v16 }
  0x3d   : > { %858 = vperm.xlu1 %1882, %v305_v9  }
  0x40   : > { %508 = vperm.xlu0 %1905, %v330_v17   ;;  %v1806_v17 = vld [vmem:[%s293_s29 + $0x3] ss:$4 sm:$0x3] }
  0x41   : > { %1883 = vset.pattern.permute.xlu1 %v2866_v3 }
  0x42   : > { %360 = vperm.xlu1 %1883, %v309_v18  }
  0x44   : > { %395 = vperm.xlu0 %1905, %v2171_v19  }
  0x46   : > { %365 = vperm.xlu1 %1883, %v310_v20  }
  0x48   : > { %513 = vperm.xlu0 %1905, %v331_v21  }
  0x4a   : > { %1885 = vset.pattern.permute.xlu1 %v2868_v2 }
  0x4b   : > { %729 = vperm.xlu1 %1885, %v308_v10  }
  0x4c   : > { %528 = vperm.xlu0 %1905, %v334_v22  }
  0x4f   : > { %1886 = vset.pattern.permute.xlu1 %v2866_v3 }
  0x50   : > { %415 = vperm.xlu0 %1905, %v2187_v23   ;;  %483 = vperm.xlu1 %1886, %v325_v24  }
  0x54   : > { %533 = vperm.xlu0 %1905, %v335_v25   ;;  %1887 = vset.pattern.permute.xlu1 %v2865_v8 }
  0x55   : > { %592 = vperm.xlu1 %1887, %v309_v18  }
  0x58   : > { %1912 = vset.pattern.permute.xlu0 %v2865_v8 }
  0x59   : > { %576 = vperm.xlu0 %1912, %v305_v9   ;;  %596 = vperm.xlu1 %1887, %v310_v20   ;;  %v1804_v9 = vld [vmem:[%s293_s29 + $0x1] ss:$4 sm:$0x3] }
  0x5d   : > { %584 = vperm.xlu0 %1912, %v2100_v1   ;;  %1888 = vset.pattern.permute.xlu1 %v2863_v16 }
  0x5e   : > { %870 = vperm.xlu1 %1888, %v308_v10  }
  0x61   : > { %600 = vperm.xlu0 %1912, %v2111_v5  }
  0x62   : > { %1889 = vset.pattern.permute.xlu1 %v2866_v3 }
  0x63   : > { %370 = vperm.xlu1 %1889, %v2111_v5  }
  0x65   : > { %616 = vperm.xlu0 %1912, %v2118_v6  }
  0x67   : > { %1890 = vset.pattern.permute.xlu1 %v2868_v2 }
  0x68   : > { %733 = vperm.xlu1 %1890, %v309_v18  }
  0x69   : > { %632 = vperm.xlu0 %1912, %v2208_v26  }
  0x6c   : > { %737 = vperm.xlu1 %1890, %v310_v20  }
  0x6d   : > { %1914 = vset.pattern.permute.xlu0 %v2863_v16 }
  0x6e   : > { %862 = vperm.xlu0 %1914, %v2123_v7   ;;  %v425_v7 = vsub.s32 1, %v420_v0 }
  0x70   : > { %1891 = vset.pattern.permute.xlu1 %v2866_v3  ;;  %v2359_v22 = vrot.slane %v1805_v13, %v425_v7 }
  0x71   : > { %498 = vperm.xlu1 %1891, %v328_v27  }
  0x72   : > { %866 = vperm.xlu0 %1914, %v2100_v1  }
  0x75   : > { %1892 = vset.pattern.permute.xlu1 %v2865_v8 }
  0x76   : > { %878 = vperm.xlu0 %1914, %v310_v20   ;;  %604 = vperm.xlu1 %1892, %v2153_v14   ;;  %v2355_v20 = vrot.slane %v1804_v9, %v425_v7 }
  0x7a   : > { %882 = vperm.xlu0 %1914, %v2111_v5   ;;  %1893 = vset.pattern.permute.xlu1 %v2863_v16  ;;  %v337_v5 = vld [vmem:[%s293_s29] ss:$4 sm:$0x3]  ;;  %s1801_s29 = sshll.u32 %s282_s23, 3 }
  0x7b   : > { %874 = vperm.xlu1 %1893, %v309_v18   ;;  %s284_s8 = scalar_lea.vmem [#allocation2], %s1801_s29 }
  0x7e   : > { %894 = vperm.xlu0 %1914, %v314_v29  }
  0x7f   : > { %1894 = vset.pattern.permute.xlu1 %v2866_v3 }
  0x80   : > { %380 = vperm.xlu1 %1894, %v313_v28  }
  0x82   : > { %898 = vperm.xlu0 %1914, %v2118_v6  }
  0x84   : > { %385 = vperm.xlu1 %1894, %v314_v29  }
  0x86   : > { %910 = vperm.xlu0 %1914, %v2234_v30  }
  0x88   : > { %1895 = vset.pattern.permute.xlu1 %v2868_v2 }
  0x89   : > { %745 = vperm.xlu1 %1895, %v2153_v14  }
  0x8a   : > { %914 = vperm.xlu0 %1914, %v2208_v26  }
  0x8d   : > { %1896 = vset.pattern.permute.xlu1 %v2866_v3 }
  0x8e   : > { %503 = vperm.xlu1 %1896, %v329_v31   ;;  %1919 = vset.pattern.permute.xlu0 %v2866_v3 }
  0x92   : > { %1897 = vset.pattern.permute.xlu1 %v2865_v8 }
  0x93   : > { %608 = vperm.xlu1 %1897, %v313_v28  }
  0x96   : > { %v2246_v32 = vpop.permute.xlu1 %463  ;;  %v2248_v33 = vpop.permute.xlu0 %725 }
  0x97   : > { %612 = vperm.xlu1 %1897, %v314_v29  }
  0x9a   : > { %v2250_v34 = vpop.permute.xlu1 %468  ;;  %v2252_v35 = vpop.permute.xlu0 %741 }
  0x9b   : > { %1898 = vset.pattern.permute.xlu1 %v2863_v16 }
  0x9c   : > { %886 = vperm.xlu1 %1898, %v2153_v14   ;;  %v2347_v14 = vrot.slane %v337_v5, %v425_v7 }
  0x9e   : > { %v2256_v36 = vpop.permute.xlu0 %757 }
  0x9f   : > { %v2258_v37 = vpop.permute.xlu1 %580 }
  0xa0   : > { %1899 = vset.pattern.permute.xlu1 %v2866_v3 }
  0xa1   : > { %390 = vperm.xlu1 %1899, %v2118_v6   ;;  %v421_v6 = vsub.s32 0, %v420_v0 }
  0xa3   : > { %v2262_v38 = vpop.permute.xlu0 %340  ;;  %v2343_v10 = vrot.slane %v337_v5, %v421_v6  ;;  %v2353_v18 = vrot.slane %v1804_v9, %v421_v6  ;;  %v2357_v21 = vrot.slane %v1805_v13, %v421_v6  ;;  %v653_v5 = vmul.f32 %v2355_v20, %v2258_v37 }
  0xa4   : > { %v2264_v39 = vpop.permute.xlu1 %350 }
  0xa5   : > { %1900 = vset.pattern.permute.xlu1 %v2868_v2  ;;  %v429_v27 = vmul.f32 %v2343_v10, %v2262_v38  ;;  %v652_v0 = vmul.f32 %v2353_v18, %v2258_v37 }
  0xa6   : > { %749 = vperm.xlu1 %1900, %v313_v28  }
  0xa7   : > { %v2267_v40 = vpop.permute.xlu0 %345 }
  0xa8   : > { %v431_v15 = vmul.f32 %v2343_v10, %v2267_v40  ;;  %v432_v24 = vmul.f32 %v2347_v14, %v2267_v40  ;;  %v2379_v40 = vmul.f32 %v2359_v22, %v2248_v33 }
  0xa9   : > { %v2269_v41 = vpop.permute.xlu1 %717 }
  0xaa   : > { %753 = vperm.xlu1 %1900, %v314_v29   ;;  %v2367_v29 = vrot.slane %v1806_v17, %v421_v6  ;;  %v543_v61 = vadd.f32 %v2250_v34, %v431_v15  ;;  %v434_v6 = vmul.f32 %v2347_v14, %v2264_v39  ;;  %v541_v15 = vadd.f32 %v2246_v32, %v429_v27 }
  0xab   : > { %v2271_v42 = vpop.permute.xlu0 %355 }
  0xad   : > { %v2276_v44 = vpop.permute.xlu1 %721 }
  0xae   : > { %1901 = vset.pattern.permute.xlu1 %v2866_v3  ;;  %v793_v9 = vmul.f32 %v2357_v21, %v2276_v44 }
  0xaf   : > { %v2279_v45 = vpop.permute.xlu0 %473  ;;  %518 = vperm.xlu1 %1901, %v332_v43   ;;  %v2375_v43 = vmul.f32 %v2357_v21, %v2248_v33  ;;  %v433_v33 = vmul.f32 %v2343_v10, %v2264_v39  ;;  %v435_v39 = vmul.f32 %v2343_v10, %v2271_v42 }
  0xb2   : > { %v2281_v46 = vpop.permute.xlu1 %478 }
  0xb3   : > { %1902 = vset.pattern.permute.xlu1 %v2865_v8  ;;  %v2284_v47 = vpop.permute.xlu0 %488 }
  0xb4   : > { %620 = vperm.xlu1 %1902, %v2171_v19  }
  0xb7   : > { %v2287_v48 = vpop.permute.xlu1 %588  ;;  %v2289_v49 = vpop.permute.xlu0 %375 }
  0xb8   : > { %1903 = vset.pattern.permute.xlu1 %v2863_v16 }
  0xb9   : > { %890 = vperm.xlu1 %1903, %v313_v28   ;;  %v430_v28 = vmul.f32 %v2347_v14, %v2262_v38  ;;  %v804_v38 = vmul.f32 %v2359_v22, %v2252_v35 }
  0xbb   : > { %v2292_v50 = vpop.permute.xlu0 %493  ;;  %v542_v37 = vadd.f32 %v2246_v32, %v430_v28 }
  0xbc   : > { %v2299_v52 = vpop.permute.xlu1 %858 }
  0xbd   : > { %1904 = vset.pattern.permute.xlu1 %v2866_v3 }
  0xbe   : > { %400 = vperm.xlu1 %1904, %v2297_v51  }
  0xbf   : > { %v2303_v53 = vpop.permute.xlu0 %508 }
  0xc1   : > { %v2305_v54 = vpop.permute.xlu1 %360 }
  0xc2   : > { %405 = vperm.xlu1 %1904, %v2234_v30  }
  0xc3   : > { %v2308_v55 = vpop.permute.xlu0 %395 }
  0xc4   : > { %2876 = vst [vmem:[#allocation5_spill] sm:$0xff] %v2308_v55 }
  0xc5   : > { %v2310_v56 = vpop.permute.xlu1 %365 }
  0xc6   : > { %1906 = vset.pattern.permute.xlu1 %v2868_v2 }
  0xc7   : > { %761 = vperm.xlu1 %1906, %v2171_v19   ;;  %v2317_v57 = vpop.permute.xlu0 %513 }
  0xca   : > { %v2323_v59 = vpop.permute.xlu1 %729 }
  0xcb   : > { %1907 = vset.pattern.permute.xlu1 %v2866_v3  ;;  %v2326_v60 = vpop.permute.xlu0 %528 }
  0xcc   : > { %2877 = vst [vmem:[#allocation6_spill] sm:$0xff] %v2326_v60  ;;  %523 = vperm.xlu1 %1907, %v333_v58   ;;  %v803_v58 = vmul.f32 %v2357_v21, %v2252_v35 }
  0xcf   : > { %v2329_v62 = vpop.permute.xlu1 %483  ;;  %v2331_v63 = vpop.permute.xlu0 %415 }
  0xd0   : > { %2878 = vst [vmem:[#allocation7_spill] sm:$0xff] %v2331_v63  ;;  %1908 = vset.pattern.permute.xlu1 %v2865_v8  ;;  %v684_v8 = vadd.f32 %v652_v0, %v543_v61  ;;  %v792_v0 = vmul.f32 %v2359_v22, %v2269_v41 }
  0xd1   : > { %624 = vperm.xlu1 %1908, %v2297_v51  }
  0xd2   : > { %v825_v63 = vadd.f32 %v793_v9, %v684_v8  ;;  %v657_v8 = vmul.f32 %v2355_v20, %v2287_v48 }
  0xd3   : > { %v2335_v1 = vpop.permute.xlu0 %533 }
  0xd4   : > { %2879 = vst [vmem:[#allocation8_spill] sm:$0xff] %v2335_v1  ;;  %v2340_v4 = vpop.permute.xlu1 %592  ;;  %v545_v1 = vadd.f32 %v2279_v45, %v433_v33 }
  0xd5   : > { %628 = vperm.xlu1 %1908, %v2234_v30  }
  0xd8   : > { %v577_v11 = vpop.permute.xlu0 %576  ;;  %v2345_v12 = vpop.permute.xlu1 %596 }
  0xd9   : > { %1909 = vset.pattern.permute.xlu1 %v2863_v16  ;;  %v650_v35 = vmul.f32 %v2353_v18, %v577_v11  ;;  %v651_v16 = vmul.f32 %v2355_v20, %v577_v11  ;;  %v2880_v11 = vmov 2  }
  0xda   : > { %902 = vperm.xlu1 %1909, %v2171_v19   ;;  %v2369_v19 = vrot.slane %v1806_v17, %v425_v7  ;;  %v544_v7 = vadd.f32 %v2250_v34, %v432_v24  ;;  %v791_v17 = vmul.f32 %v2357_v21, %v2269_v41  ;;  %v436_v34 = vmul.f32 %v2347_v14, %v2271_v42 }
  0xdb   : > { %v794_v24 = vmul.f32 %v2359_v22, %v2276_v44  ;;  %v682_v42 = vadd.f32 %v650_v35, %v541_v15  ;;  %v683_v60 = vadd.f32 %v651_v16, %v542_v37 }
  0xdc   : > { %v585_v25 = vpop.permute.xlu0 %584  ;;  %v685_v61 = vadd.f32 %v653_v5, %v544_v7  ;;  %v656_v5 = vmul.f32 %v2353_v18, %v2287_v48  ;;  %v547_v7 = vadd.f32 %v2281_v46, %v435_v39  ;;  %v548_v9 = vadd.f32 %v2281_v46, %v436_v34 }
  0xdd   : > { %v2371_v31 = vpop.permute.xlu1 %870  ;;  %v655_v15 = vmul.f32 %v2355_v20, %v585_v25  ;;  %v824_v46 = vadd.f32 %v792_v0, %v683_v60  ;;  %v933_v60 = vmul.f32 %v2369_v19, %v2299_v52 }
  0xde   : > { %1910 = vset.pattern.permute.xlu1 %v2866_v3  ;;  %v826_v41 = vadd.f32 %v794_v24, %v685_v61  ;;  %v688_v39 = vadd.f32 %v656_v5, %v547_v7  ;;  %v689_v34 = vadd.f32 %v657_v8, %v548_v9  ;;  %v797_v24 = vmul.f32 %v2357_v21, %v2323_v59 }
  0xdf   : > { %410 = vperm.xlu1 %1910, %v2208_v26   ;;  %v2881_v61 = vmov 0  }
  0xe0   : > { %v601_v13 = vpop.permute.xlu0 %600 }
  0xe1   : > { %v662_v27 = vmul.f32 %v2353_v18, %v601_v13  ;;  %v663_v32 = vmul.f32 %v2355_v20, %v601_v13 }
  0xe2   : > { %v371_v3 = vpop.permute.xlu1 %370 }
  0xe3   : > { %v441_v28 = vmul.f32 %v2343_v10, %v371_v3  ;;  %v442_v2 = vmul.f32 %v2347_v14, %v371_v3  ;;  %1911 = vset.pattern.permute.xlu1 %v2880_v11  ;;  %v546_v3 = vadd.f32 %v2279_v45, %v434_v6  ;;  %v440_v45 = vmul.f32 %v2347_v14, %v2310_v56 }
  0xe4   : > { %765 = vperm.xlu1 %1911, %v2297_v51   ;;  %v2419_v44 = vpop.permute.xlu0 %616  ;;  %v654_v6 = vmul.f32 %v2353_v18, %v585_v25  ;;  %v932_v25 = vmul.f32 %v2367_v29, %v2299_v52 }
  0xe5   : > { %v553_v13 = vadd.f32 %v2292_v50, %v441_v28  ;;  %v554_v55 = vadd.f32 %v2292_v50, %v442_v2  ;;  %v439_v2 = vmul.f32 %v2343_v10, %v2310_v56  ;;  %v823_v50 = vadd.f32 %v791_v17, %v682_v42 }
  0xe6   : > { %v798_v56 = vmul.f32 %v2359_v22, %v2323_v59  ;;  %v552_v59 = vadd.f32 %v2284_v47, %v440_v45  ;;  %v939_v28 = vmul.f32 %v2369_v19, %v2371_v31  ;;  %v686_v52 = vadd.f32 %v654_v6, %v545_v1 }
  0xe7   : > { %v694_v35 = vadd.f32 %v662_v27, %v553_v13  ;;  %v695_v33 = vadd.f32 %v663_v32, %v554_v55  ;;  %v2431_v16 = vpop.permute.xlu1 %733  ;;  %v551_v27 = vadd.f32 %v2284_v47, %v439_v2  ;;  %v938_v32 = vmul.f32 %v2367_v29, %v2371_v31 }
  0xe8   : > { %769 = vperm.xlu1 %1911, %v2234_v30   ;;  %v2439_v48 = vpop.permute.xlu0 %632  ;;  %v336_v30 = vld [vmem:[%s2857_s2 + $0x78] sm:$0xff]  ;;  %v687_v0 = vadd.f32 %v655_v15, %v546_v3  ;;  %v965_v13 = vadd.f32 %v933_v60, %v824_v46  ;;  %v964_v5 = vadd.f32 %v932_v25, %v823_v50  ;;  %v830_v8 = vadd.f32 %v798_v56, %v689_v34 }
  0xe9   : > { %v2442_v37 = vadd.f32 %v803_v58, %v694_v35  ;;  %v2444_v55 = vadd.f32 %v804_v38, %v695_v33  ;;  %v437_v58 = vmul.f32 %v2343_v10, %v2305_v54  ;;  %v438_v38 = vmul.f32 %v2347_v14, %v2305_v54 }
  0xea   : > { %v829_v54 = vadd.f32 %v797_v24, %v688_v39  ;;  %v658_v31 = vmul.f32 %v2353_v18, %v2340_v4  ;;  %v660_v1 = vmul.f32 %v2353_v18, %v2345_v12  ;;  %v971_v33 = vadd.f32 %v939_v28, %v830_v8 }
  0xeb   : > { %v738_v17 = vpop.permute.xlu1 %737  ;;  %v549_v9 = vadd.f32 %v2329_v62, %v437_v58  ;;  %v550_v35 = vadd.f32 %v2329_v62, %v438_v38  ;;  %v827_v15 = vadd.f32 %v2375_v43, %v686_v52  ;;  %v828_v46 = vadd.f32 %v2379_v40, %v687_v0 }
  0xec   : > { %1913 = vset.pattern.permute.xlu1 %v2881_v61  ;;  %v970_v3 = vadd.f32 %v938_v32, %v829_v54  ;;  %v2882_v39 = vmov 1   ;;  %v997_v62 = vmax.f32 %v965_v13, 0.0  ;;  %v996_v34 = vmax.f32 %v964_v5, 0.0 }
  0xed   : > { %v863_v42 = vpop.permute.xlu0 %862  ;;  %538 = vperm.xlu1 %1913, %v336_v30   ;;  %v661_v43 = vmul.f32 %v2355_v20, %v2345_v12  ;;  %v692_v25 = vadd.f32 %v660_v1, %v551_v27  ;;  %v801_v40 = vmul.f32 %v2357_v21, %v738_v17  ;;  %v799_v28 = vmul.f32 %v2357_v21, %v2431_v16 }
  0xee   : > { %v934_v7 = vmul.f32 %v2367_v29, %v863_v42  ;;  %v935_v47 = vmul.f32 %v2369_v19, %v863_v42  ;;  %v802_v52 = vmul.f32 %v2359_v22, %v738_v17  ;;  %v1003_v13 = vmax.f32 %v971_v33, 0.0 }
  0xef   : > { %v1002_v5 = vmax.f32 %v970_v3, 0.0  ;;  %v2883_v8 = vmov 3   ;;  %v833_v33 = vadd.f32 %v801_v40, %v692_v25  ;;  %v443_v25 = vmul.f32 %v2343_v10, %v2289_v49 }
  0xf0   : > { %v966_v2 = vadd.f32 %v934_v7, %v825_v63  ;;  %v2476_v45 = vpop.permute.xlu1 %498  ;;  %v967_v50 = vadd.f32 %v935_v47, %v826_v41  ;;  %v659_v41 = vmul.f32 %v2355_v20, %v2340_v4  ;;  %v800_v4 = vmul.f32 %v2359_v22, %v2431_v16 }
  0xf1   : > { %v867_v6 = vpop.permute.xlu0 %866  ;;  %1915 = vset.pattern.permute.xlu1 %v2882_v39  ;;  %v690_v7 = vadd.f32 %v658_v31, %v549_v9  ;;  %v693_v47 = vadd.f32 %v661_v43, %v552_v59  ;;  %v444_v40 = vmul.f32 %v2347_v14, %v2289_v49 }
  0xf2   : > { %v936_v24 = vmul.f32 %v2367_v29, %v867_v6  ;;  %v937_v56 = vmul.f32 %v2369_v19, %v867_v6  ;;  %636 = vperm.xlu1 %1915, %v2187_v23   ;;  %v999_v30 = vmax.f32 %v967_v50, 0.0  ;;  %v998_v63 = vmax.f32 %v966_v2, 0.0 }
  0xf3   : > { %v691_v17 = vadd.f32 %v659_v41, %v550_v35  ;;  %v834_v50 = vadd.f32 %v802_v52, %v693_v47  ;;  %v831_v16 = vadd.f32 %v799_v28, %v690_v7  ;;  %v555_v52 = vadd.f32 %v2476_v45, %v443_v25 }
  0xf4   : > { %v968_v60 = vadd.f32 %v936_v24, %v827_v15  ;;  %v969_v58 = vadd.f32 %v937_v56, %v828_v46  ;;  %v1029_v38 = vpack.c.bf16 %v999_v30, %v997_v62  ;;  %v1028_v32 = vpack.c.bf16 %v998_v63, %v996_v34 }
  0xf5   : > { %v879_v0 = vpop.permute.xlu0 %878  ;;  %v605_v42 = vpop.permute.xlu1 %604  ;;  %v832_v6 = vadd.f32 %v800_v4, %v691_v17 }
  0xf6   : > { %v1000_v12 = vmax.f32 %v968_v60, 0.0  ;;  %v1001_v27 = vmax.f32 %v969_v58, 0.0  ;;  %v942_v54 = vmul.f32 %v2367_v29, %v879_v0  ;;  %1916 = vset.pattern.permute.xlu1 %v2883_v8  ;;  %1364 = vmatprep.subr.bf16.mxu0 %v1029_v38  ;;  %v943_v1 = vmul.f32 %v2369_v19, %v879_v0 }
  0xf7   : > { %906 = vperm.xlu1 %1916, %v2297_v51   ;;  %1365 = vmatpush1.bf16.msra.mxu0 %v1028_v32  ;;  %v664_v58 = vmul.f32 %v2353_v18, %v605_v42  ;;  %v665_v38 = vmul.f32 %v2355_v20, %v605_v42  ;;  %v556_v0 = vadd.f32 %v2476_v45, %v444_v40 }
  0xf8   : > { %v1031_v3 = vpack.c.bf16 %v1003_v13, %v1001_v27  ;;  %v1030_v2 = vpack.c.bf16 %v1002_v5, %v1000_v12  ;;  %v974_v15 = vadd.f32 %v942_v54, %v833_v33  ;;  %v975_v39 = vadd.f32 %v943_v1, %v834_v50 }
  0xf9   : > { %v883_v60 = vpop.permute.xlu0 %882  ;;  %v696_v4 = vadd.f32 %v664_v58, %v555_v52  ;;  %v697_v49 = vadd.f32 %v665_v38, %v556_v0 }
  0xfa   : > { %v875_v46 = vpop.permute.xlu1 %874  ;;  %1366 = vmatprep.subr.bf16.mxu0 %v1031_v3  ;;  %v1006_v35 = vmax.f32 %v974_v15, 0.0  ;;  %v1007_v31 = vmax.f32 %v975_v39, 0.0  ;;  %v945_v28 = vmul.f32 %v2369_v19, %v883_v60 }
  0xfb   : > { %v940_v62 = vmul.f32 %v2367_v29, %v875_v46  ;;  %v941_v59 = vmul.f32 %v2369_v19, %v875_v46  ;;  %1917 = vset.pattern.permute.xlu1 %v2880_v11  ;;  %1367 = vmatpush1.bf16.msra.mxu0 %v1030_v2 }
  0xfc   : > { %773 = vperm.xlu1 %1917, %v2208_v26   ;;  %v977_v27 = vadd.f32 %v945_v28, %v2444_v55 }
  0xfd   : > { %v972_v51 = vadd.f32 %v940_v62, %v831_v16  ;;  %v973_v9 = vadd.f32 %v941_v59, %v832_v6  ;;  %v670_v16 = vmul.f32 %v2353_v18, %v2419_v44  ;;  %v811_v59 = vmul.f32 %v2357_v21, %v2256_v36 }
  0xfe   : > { %v1009_v33 = vmax.f32 %v977_v27, 0.0 }
  0xff   : > { %v1004_v34 = vmax.f32 %v972_v51, 0.0  ;;  %v1005_v24 = vmax.f32 %v973_v9, 0.0  ;;  %v2502_v56 = vpop.permute.xlu1 %380  ;;  %v812_v51 = vmul.f32 %v2359_v22, %v2256_v36 }
 0x100   : > { %777 = vperm.xlu1 %1917, %v2187_v23   ;;  %v445_v38 = vmul.f32 %v2343_v10, %v2502_v56 }
 0x101   : > { %v1033_v30 = vpack.c.bf16 %v1007_v31, %v1005_v24  ;;  %v1032_v63 = vpack.c.bf16 %v1006_v35, %v1004_v34 }
 0x103   : > { %v386_v41 = vpop.permute.xlu1 %385  ;;  %1368 = vmatprep.subr.bf16.mxu0 %v1033_v30 }
 0x104   : > { %1918 = vset.pattern.permute.xlu1 %v2883_v8  ;;  %1369 = vmatpush1.bf16.msra.mxu0 %v1032_v63  ;;  %v447_v30 = vmul.f32 %v2343_v10, %v386_v41 }
 0x105   : > { %918 = vperm.xlu1 %1918, %v2187_v23   ;;  %v944_v23 = vmul.f32 %v2367_v29, %v883_v60 }
 0x106   : > { %v559_v36 = vadd.f32 %v2303_v53, %v447_v30 }
 0x107   : > { %v976_v12 = vadd.f32 %v944_v23, %v2442_v37  ;;  %v671_v37 = vmul.f32 %v2355_v20, %v2419_v44  ;;  %v446_v23 = vmul.f32 %v2347_v14, %v2502_v56 }
 0x108   : > { %v746_v26 = vpop.permute.xlu1 %745 }
 0x109   : > { %1920 = vset.pattern.permute.xlu1 %v2881_v61  ;;  %v805_v13 = vmul.f32 %v2357_v21, %v746_v26  ;;  %v806_v5 = vmul.f32 %v2359_v22, %v746_v26  ;;  %v1008_v45 = vmax.f32 %v976_v12, 0.0 }
 0x10b   : > { %v837_v54 = vadd.f32 %v805_v13, %v696_v4  ;;  %v838_v8 = vadd.f32 %v806_v5, %v697_v49  ;;  %v895_v5 = vpop.permute.xlu0 %894 }
 0x10c   : > { %v950_v12 = vmul.f32 %v2367_v29, %v895_v5  ;;  %v951_v56 = vmul.f32 %v2369_v19, %v895_v5 }
 0x10d   : > { %v2508_v11 = vpop.permute.xlu1 %503 }
 0x10e   : > { %v557_v13 = vadd.f32 %v2508_v11, %v445_v38 }
 0x112   : > { %v609_v43 = vpop.permute.xlu1 %608 }
 0x113   : > { %v667_v28 = vmul.f32 %v2355_v20, %v609_v43 }
 0x116   : > { %v613_v32 = vpop.permute.xlu1 %612 }
 0x117   : > { %v668_v26 = vmul.f32 %v2353_v18, %v613_v32  ;;  %v669_v25 = vmul.f32 %v2355_v20, %v613_v32 }
 0x119   : > { %v700_v52 = vadd.f32 %v668_v26, %v559_v36 }
 0x11b   : > { %v887_v42 = vpop.permute.xlu1 %886 }
 0x11c   : > { %v946_v7 = vmul.f32 %v2367_v29, %v887_v42  ;;  %v947_v47 = vmul.f32 %v2369_v19, %v887_v42 }
 0x11e   : > { %v978_v1 = vadd.f32 %v946_v7, %v837_v54  ;;  %v979_v17 = vadd.f32 %v947_v47, %v838_v8 }
 0x120   : > { %v1010_v3 = vmax.f32 %v978_v1, 0.0  ;;  %v1011_v2 = vmax.f32 %v979_v17, 0.0  ;;  %v391_v50 = vpop.permute.xlu1 %390 }
 0x121   : > { %v449_v55 = vmul.f32 %v2343_v10, %v391_v50  ;;  %v450_v6 = vmul.f32 %v2347_v14, %v391_v50 }
 0x122   : > { %v1035_v15 = vpack.c.bf16 %v1011_v2, %v1009_v33  ;;  %v1034_v46 = vpack.c.bf16 %v1010_v3, %v1008_v45 }
 0x123   : > { %v561_v39 = vadd.f32 %v2317_v57, %v449_v55  ;;  %v562_v62 = vadd.f32 %v2317_v57, %v450_v6  ;;  %v448_v57 = vmul.f32 %v2347_v14, %v386_v41  ;;  %v666_v41 = vmul.f32 %v2353_v18, %v609_v43 }
 0x124   : > { %1370 = vmatprep.subr.bf16.mxu0 %v1035_v15 }
 0x125   : > { %v702_v9 = vadd.f32 %v670_v16, %v561_v39  ;;  %v703_v35 = vadd.f32 %v671_v37, %v562_v62  ;;  %v750_v44 = vpop.permute.xlu1 %749  ;;  %1371 = vmatpush1.bf16.msra.mxu0 %v1034_v46  ;;  %v560_v40 = vadd.f32 %v2303_v53, %v448_v57  ;;  %v558_v53 = vadd.f32 %v2508_v11, %v446_v23 }
 0x126   : > { %v807_v4 = vmul.f32 %v2357_v21, %v750_v44  ;;  %v808_v49 = vmul.f32 %v2359_v22, %v750_v44  ;;  %v698_v54 = vadd.f32 %v666_v41, %v557_v13 }
 0x127   : > { %v2538_v31 = vadd.f32 %v811_v59, %v702_v9  ;;  %v2540_v34 = vadd.f32 %v812_v51, %v703_v35  ;;  %v701_v32 = vadd.f32 %v669_v25, %v560_v40  ;;  %v699_v43 = vadd.f32 %v667_v28, %v558_v53  ;;  %v899_v51 = vpop.permute.xlu0 %898  ;;  %v2884_v9 = vld [vmem:[#allocation5_spill] sm:$0xff] }
 0x128   : > { %v839_v8 = vadd.f32 %v807_v4, %v698_v54  ;;  %v451_v35 = vmul.f32 %v2343_v10, %v2884_v9  ;;  %v452_v44 = vmul.f32 %v2347_v14, %v2884_v9  ;;  %v952_v26 = vmul.f32 %v2367_v29, %v899_v51 }
 0x129   : > { %v754_v24 = vpop.permute.xlu1 %753  ;;  %v840_v7 = vadd.f32 %v808_v49, %v699_v43  ;;  %v953_v25 = vmul.f32 %v2369_v19, %v899_v51 }
 0x12a   : > { %v809_v60 = vmul.f32 %v2357_v21, %v754_v24  ;;  %v810_v58 = vmul.f32 %v2359_v22, %v754_v24  ;;  %v984_v41 = vadd.f32 %v952_v26, %v2538_v31  ;;  %v1077_v31 = vld [vmem:[%s2859_s4 + $0x8] sm:$0xff]  ;;  %v1083_v26 = vld [vmem:[%s2859_s4 + $0x38] sm:$0xff] }
 0x12b   : > { %v985_v28 = vadd.f32 %v953_v25, %v2540_v34  ;;  %v1076_v34 = vld [vmem:[%s2859_s4] sm:$0xff]  ;;  %1115 = vperm.xlu1 %1920, %v1077_v31   ;;  %v2886_v31 = vld [vmem:[#allocation8_spill] sm:$0xff] }
 0x12c   : > { %v841_v27 = vadd.f32 %v809_v60, %v700_v52  ;;  %v842_v42 = vadd.f32 %v810_v58, %v701_v32  ;;  %1110 = vperm.xlu0 %1919, %v1076_v34   ;;  %v1084_v25 = vld [vmem:[%s2859_s4 + $0x40] sm:$0xff] }
 0x12d   : > { %v1017_v49 = vmax.f32 %v985_v28, 0.0 }
 0x12e   : > { %v519_v63 = vpop.permute.xlu1 %518  ;;  %v982_v1 = vadd.f32 %v950_v12, %v841_v27  ;;  %v983_v17 = vadd.f32 %v951_v56, %v842_v42 }
 0x12f   : > { %v563_v36 = vadd.f32 %v519_v63, %v451_v35  ;;  %v564_v40 = vadd.f32 %v519_v63, %v452_v44  ;;  %v1016_v63 = vmax.f32 %v984_v41, 0.0  ;;  %v1085_v41 = vld [vmem:[%s2859_s4 + $0x48] sm:$0xff] }
 0x130   : > { %v1015_v37 = vmax.f32 %v983_v17, 0.0  ;;  %v1014_v55 = vmax.f32 %v982_v1, 0.0  ;;  %v1080_v1 = vld [vmem:[%s2859_s4 + $0x20] sm:$0xff] }
 0x133   : > { %v621_v0 = vpop.permute.xlu1 %620 }
 0x134   : > { %v672_v24 = vmul.f32 %v2353_v18, %v621_v0  ;;  %v673_v30 = vmul.f32 %v2355_v20, %v621_v0 }
 0x136   : > { %v704_v38 = vadd.f32 %v672_v24, %v563_v36  ;;  %v705_v23 = vadd.f32 %v673_v30, %v564_v40 }
 0x138   : > { %v891_v47 = vpop.permute.xlu1 %890 }
 0x139   : > { %v948_v11 = vmul.f32 %v2367_v29, %v891_v47  ;;  %v949_v45 = vmul.f32 %v2369_v19, %v891_v47  ;;  %v1079_v47 = vld [vmem:[%s2859_s4 + $0x18] sm:$0xff] }
 0x13a   : > { %1125 = vperm.xlu0 %1919, %v1079_v47  }
 0x13b   : > { %v980_v33 = vadd.f32 %v948_v11, %v839_v8  ;;  %v981_v3 = vadd.f32 %v949_v45, %v840_v7  ;;  %v1078_v8 = vld [vmem:[%s2859_s4 + $0x10] sm:$0xff]  ;;  %v1081_v45 = vld [vmem:[%s2859_s4 + $0x28] sm:$0xff] }
 0x13c   : > { %1120 = vperm.xlu1 %1920, %v1078_v8  }
 0x13d   : > { %v1012_v2 = vmax.f32 %v980_v33, 0.0  ;;  %v1013_v50 = vmax.f32 %v981_v3, 0.0  ;;  %v2564_v16 = vpop.permute.xlu1 %400  ;;  %v1082_v33 = vld [vmem:[%s2859_s4 + $0x30] sm:$0xff] }
 0x13e   : > { %1135 = vperm.xlu0 %1919, %v1081_v45   ;;  %v454_v51 = vmul.f32 %v2347_v14, %v2564_v16  ;;  %v1090_v45 = vld [vmem:[%s2859_s4 + $0x70] sm:$0xff] }
 0x13f   : > { %v1037_v6 = vpack.c.bf16 %v1015_v37, %v1013_v50  ;;  %v1036_v15 = vpack.c.bf16 %v1014_v55, %v1012_v2  ;;  %v453_v37 = vmul.f32 %v2343_v10, %v2564_v16  ;;  %v2885_v55 = vld [vmem:[#allocation6_spill] sm:$0xff] }
 0x140   : > { %1130 = vperm.xlu1 %1920, %v1080_v1  }
 0x141   : > { %v406_v46 = vpop.permute.xlu1 %405  ;;  %1372 = vmatprep.subr.bf16.mxu0 %v1037_v6 }
 0x142   : > { %1373 = vmatpush1.bf16.msra.mxu0 %v1036_v15  ;;  %v455_v17 = vmul.f32 %v2343_v10, %v406_v46  ;;  %v456_v11 = vmul.f32 %v2347_v14, %v406_v46  ;;  %1145 = vperm.xlu0 %1919, %v1083_v26  }
 0x144   : > { %1140 = vperm.xlu1 %1920, %v1082_v33   ;;  %v567_v6 = vadd.f32 %v2885_v55, %v455_v17  ;;  %v568_v15 = vadd.f32 %v2885_v55, %v456_v11  ;;  %v1089_v11 = vld [vmem:[%s2859_s4 + $0x68] sm:$0xff]  ;;  %v678_v33 = vmul.f32 %v2353_v18, %v2439_v48 }
 0x146   : > { %v762_v39 = vpop.permute.xlu1 %761  ;;  %1155 = vperm.xlu0 %1919, %v1085_v41  }
 0x147   : > { %v813_v60 = vmul.f32 %v2357_v21, %v762_v39  ;;  %v814_v58 = vmul.f32 %v2359_v22, %v762_v39 }
 0x148   : > { %1150 = vperm.xlu1 %1920, %v1084_v25  }
 0x149   : > { %v845_v32 = vadd.f32 %v813_v60, %v704_v38  ;;  %v846_v0 = vadd.f32 %v814_v58, %v705_v23 }
 0x14b   : > { %v2566_v62 = vpop.permute.xlu1 %523 }
 0x14c   : > { %v565_v44 = vadd.f32 %v2566_v62, %v453_v37  ;;  %v566_v36 = vadd.f32 %v2566_v62, %v454_v51  ;;  %v1086_v62 = vld [vmem:[%s2859_s4 + $0x50] sm:$0xff] }
 0x14d   : > { %1160 = vperm.xlu1 %1920, %v1086_v62  }
 0x150   : > { %v625_v59 = vpop.permute.xlu1 %624 }
 0x151   : > { %v674_v9 = vmul.f32 %v2353_v18, %v625_v59  ;;  %v675_v35 = vmul.f32 %v2355_v20, %v625_v59  ;;  %v911_v59 = vpop.permute.xlu0 %910 }
 0x152   : > { %v958_v60 = vmul.f32 %v2367_v29, %v911_v59  ;;  %v959_v58 = vmul.f32 %v2369_v19, %v911_v59 }
 0x153   : > { %v706_v28 = vadd.f32 %v674_v9, %v565_v44 }
 0x154   : > { %v629_v57 = vpop.permute.xlu1 %628 }
 0x155   : > { %v676_v2 = vmul.f32 %v2353_v18, %v629_v57  ;;  %v677_v50 = vmul.f32 %v2355_v20, %v629_v57 }
 0x157   : > { %v708_v24 = vadd.f32 %v676_v2, %v567_v6  ;;  %v709_v30 = vadd.f32 %v677_v50, %v568_v15  ;;  %v679_v2 = vmul.f32 %v2355_v20, %v2439_v48 }
 0x159   : > { %v903_v52 = vpop.permute.xlu1 %902 }
 0x15a   : > { %v954_v13 = vmul.f32 %v2367_v29, %v903_v52  ;;  %v955_v53 = vmul.f32 %v2369_v19, %v903_v52  ;;  %v707_v52 = vadd.f32 %v675_v35, %v566_v36  ;;  %v915_v35 = vpop.permute.xlu0 %914 }
 0x15c   : > { %v986_v5 = vadd.f32 %v954_v13, %v845_v32  ;;  %v987_v4 = vadd.f32 %v955_v53, %v846_v0 }
 0x15e   : > { %v1018_v12 = vmax.f32 %v986_v5, 0.0  ;;  %v1019_v56 = vmax.f32 %v987_v4, 0.0  ;;  %v411_v27 = vpop.permute.xlu1 %410 }
 0x15f   : > { %v457_v32 = vmul.f32 %v2343_v10, %v411_v27  ;;  %v458_v0 = vmul.f32 %v2347_v14, %v411_v27  ;;  %v1088_v27 = vld [vmem:[%s2859_s4 + $0x60] sm:$0xff] }
 0x160   : > { %v1039_v42 = vpack.c.bf16 %v1019_v56, %v1017_v49  ;;  %v1038_v54 = vpack.c.bf16 %v1018_v12, %v1016_v63  ;;  %1170 = vperm.xlu1 %1920, %v1088_v27   ;;  %v1102_v27 = vld [vmem:[%s2859_s4 + $0xd0] sm:$0xff] }
 0x161   : > { %v569_v34 = vadd.f32 %v2886_v31, %v457_v32 }
 0x162   : > { %1374 = vmatprep.subr.bf16.mxu0 %v1039_v42 }
 0x163   : > { %v766_v43 = vpop.permute.xlu1 %765  ;;  %1375 = vmatpush1.bf16.msra.mxu0 %v1038_v54  ;;  %v1087_v54 = vld [vmem:[%s2859_s4 + $0x58] sm:$0xff]  ;;  %v710_v15 = vadd.f32 %v678_v33, %v569_v34  ;;  %v1926_v33 = vld [vmem:[%s2858_s3 + $0x28] sm:$0xff]  }
 0x164   : > { %v815_v16 = vmul.f32 %v2357_v21, %v766_v43  ;;  %v816_v40 = vmul.f32 %v2359_v22, %v766_v43  ;;  %v570_v43 = vadd.f32 %v2886_v31, %v458_v0  ;;  %1165 = vperm.xlu0 %1919, %v1087_v54   ;;  %1180 = vperm.xlu1 %1920, %v1090_v45   ;;  %v1101_v54 = vld [vmem:[%s2859_s4 + $0xc8] sm:$0xff]  ;;  %v1103_v34 = vld [vmem:[%s2859_s4 + $0xd8] sm:$0xff]  ;;  %v1925_v45 = vld [vmem:[%s2858_s3 + $0x20] sm:$0xff]  }
 0x165   : > { %v1922_v31 = vld [vmem:[%s2858_s3 + $0x8] sm:$0xff]  }
 0x166   : > { %v847_v13 = vadd.f32 %v815_v16, %v706_v28  ;;  %v848_v53 = vadd.f32 %v816_v40, %v707_v52 }
 0x167   : > { %v770_v7 = vpop.permute.xlu1 %769 }
 0x168   : > { %v817_v46 = vmul.f32 %v2357_v21, %v770_v7  ;;  %v818_v39 = vmul.f32 %v2359_v22, %v770_v7  ;;  %1175 = vperm.xlu0 %1919, %v1089_v11   ;;  %v1924_v11 = vld [vmem:[%s2858_s3 + $0x18] sm:$0xff]  }
 0x16a   : > { %v849_v38 = vadd.f32 %v817_v46, %v708_v24  ;;  %v850_v23 = vadd.f32 %v818_v39, %v709_v30  ;;  %v711_v46 = vadd.f32 %v679_v2, %v570_v43  ;;  %v2887_v39 = vld [vmem:[#allocation7_spill] sm:$0xff]  ;;  %v1927_v2 = vld [vmem:[%s2858_s3 + $0x30] sm:$0xff]  }
 0x16b   : > { %v459_v51 = vmul.f32 %v2343_v10, %v2887_v39  ;;  %v460_v9 = vmul.f32 %v2347_v14, %v2887_v39  ;;  %v1091_v14 = vld [vmem:[%s2859_s4 + $0x78] sm:$0xff]  ;;  %v1104_v43 = vld [vmem:[%s2859_s4 + $0xe0] sm:$0xff]  ;;  %v1934_v39 = vld [vmem:[%s2858_s3 + $0x68] sm:$0xff]  }
 0x16c   : > { %v2605_v3 = vpop.permute.xlu1 %538  ;;  %v990_v4 = vadd.f32 %v958_v60, %v849_v38  ;;  %v991_v63 = vadd.f32 %v959_v58, %v850_v23  ;;  %1185 = vperm.xlu0 %1919, %v1091_v14  }
 0x16d   : > { %v571_v25 = vadd.f32 %v2605_v3, %v459_v51  ;;  %v572_v36 = vadd.f32 %v2605_v3, %v460_v9  ;;  %v1935_v51 = vld [vmem:[%s2858_s3 + $0x70] sm:$0xff]   ;;  %v1936_v9 = vld [vmem:[%s2858_s3 + $0x78] sm:$0xff]  }
 0x16e   : > { %v1023_v1 = vmax.f32 %v991_v63, 0.0  ;;  %v1022_v17 = vmax.f32 %v990_v4, 0.0  ;;  %v1096_v4 = vld [vmem:[%s2859_s4 + $0xa0] sm:$0xff]  ;;  %v1097_v63 = vld [vmem:[%s2859_s4 + $0xa8] sm:$0xff] }
 0x171   : > { %v637_v57 = vpop.permute.xlu1 %636 }
 0x172   : > { %v680_v44 = vmul.f32 %v2353_v18, %v637_v57  ;;  %v681_v48 = vmul.f32 %v2355_v20, %v637_v57  ;;  %v1092_v18 = vld [vmem:[%s2859_s4 + $0x80] sm:$0xff]  ;;  %v960_v20 = vmul.f32 %v2367_v29, %v915_v35  ;;  %v961_v57 = vmul.f32 %v2369_v19, %v915_v35 }
 0x173   : > { %1190 = vperm.xlu1 %1920, %v1092_v18  }
 0x174   : > { %v712_v40 = vadd.f32 %v680_v44, %v571_v25  ;;  %v713_v3 = vadd.f32 %v681_v48, %v572_v36 }
 0x176   : > { %v907_v5 = vpop.permute.xlu1 %906 }
 0x177   : > { %v956_v49 = vmul.f32 %v2367_v29, %v907_v5  ;;  %v957_v12 = vmul.f32 %v2369_v19, %v907_v5  ;;  %v1095_v5 = vld [vmem:[%s2859_s4 + $0x98] sm:$0xff] }
 0x179   : > { %v988_v56 = vadd.f32 %v956_v49, %v847_v13  ;;  %v989_v42 = vadd.f32 %v957_v12, %v848_v53  ;;  %v1098_v49 = vld [vmem:[%s2859_s4 + $0xb0] sm:$0xff]  ;;  %v1921_v12 = vld [vmem:[%s2858_s3] sm:$0xff]  }
 0x17b   : > { %v1020_v8 = vmax.f32 %v988_v56, 0.0  ;;  %v1021_v7 = vmax.f32 %v989_v42, 0.0  ;;  %v774_v47 = vpop.permute.xlu1 %773  ;;  %v1099_v56 = vld [vmem:[%s2859_s4 + $0xb8] sm:$0xff]  ;;  %v1100_v42 = vld [vmem:[%s2859_s4 + $0xc0] sm:$0xff] }
 0x17c   : > { %v819_v50 = vmul.f32 %v2357_v21, %v774_v47  ;;  %v820_v37 = vmul.f32 %v2359_v22, %v774_v47  ;;  %v1923_v47 = vld [vmem:[%s2858_s3 + $0x10] sm:$0xff]  }
 0x17d   : > { %v1041_v55 = vpack.c.bf16 %v1023_v1, %v1021_v7  ;;  %v1040_v6 = vpack.c.bf16 %v1022_v17, %v1020_v8  ;;  %v1105_v8 = vld [vmem:[%s2859_s4 + $0xe8] sm:$0xff]  ;;  %v1106_v7 = vld [vmem:[%s2859_s4 + $0xf0] sm:$0xff]  ;;  %v1107_v1 = vld [vmem:[%s2859_s4 + $0xf8] sm:$0xff] }
 0x17e   : > { %v851_v30 = vadd.f32 %v819_v50, %v710_v15  ;;  %v852_v26 = vadd.f32 %v820_v37, %v711_v46  ;;  %v1654_v17 = vld [vmem:[%s2861_s6] sm:$0xf]  ;;  %v1928_v50 = vld [vmem:[%s2858_s3 + $0x38] sm:$0xff]  }
 0x17f   : > { %v778_v24 = vpop.permute.xlu1 %777  ;;  %1376 = vmatprep.subr.bf16.mxu0 %v1041_v55  ;;  %v1929_v37 = vld [vmem:[%s2858_s3 + $0x40] sm:$0xff]   ;;  %v1930_v55 = vld [vmem:[%s2858_s3 + $0x48] sm:$0xff]   ;;  %v1932_v15 = vld [vmem:[%s2858_s3 + $0x58] sm:$0xff]  }
 0x180   : > { %1377 = vmatpush1.bf16.msra.mxu0 %v1040_v6  ;;  %v821_v16 = vmul.f32 %v2357_v21, %v778_v24  ;;  %v822_v10 = vmul.f32 %v2359_v22, %v778_v24  ;;  %v1093_v21 = vld [vmem:[%s2859_s4 + $0x88] sm:$0xff]  ;;  %v1094_v22 = vld [vmem:[%s2859_s4 + $0x90] sm:$0xff]  ;;  %v992_v59 = vadd.f32 %v960_v20, %v851_v30  ;;  %v993_v60 = vadd.f32 %v961_v57, %v852_v26  ;;  %v1933_v46 = vld [vmem:[%s2858_s3 + $0x60] sm:$0xff]  }
 0x181   : > { %1195 = vperm.xlu0 %1919, %v1093_v21   ;;  %1200 = vperm.xlu1 %1920, %v1094_v22   ;;  %v1931_v6 = vld [vmem:[%s2858_s3 + $0x50] sm:$0xff]  }
 0x182   : > { %v853_v38 = vadd.f32 %v821_v16, %v712_v40  ;;  %v854_v23 = vadd.f32 %v822_v10, %v713_v3  ;;  %v1025_v13 = vmax.f32 %v993_v60, 0.0  ;;  %v1024_v53 = vmax.f32 %v992_v59, 0.0  ;;  %v2795_v10 = vld.sshfl [vmem:[%s2860_s5] sm:$0x33 pattern:$0x76325410] }
 0x183   : > { %v1668_v14 = vcombine.high %v2795_v10, %v2795_v10 }
 0x184   : > { %v919_v58 = vpop.permute.xlu1 %918 }
 0x185   : > { %v962_v41 = vmul.f32 %v2367_v29, %v919_v58  ;;  %v963_v62 = vmul.f32 %v2369_v19, %v919_v58  ;;  %1205 = vperm.xlu0 %1919, %v1095_v5   ;;  %1210 = vperm.xlu1 %1920, %v1096_v4  }
 0x186   : > { %1703 = vmatprep.mubr.bf16.mxu1 %v1668_v14 }
 0x187   : > { %v994_v28 = vadd.f32 %v962_v41, %v853_v38  ;;  %v995_v52 = vadd.f32 %v963_v62, %v854_v23 }
 0x189   : > { %v1026_v32 = vmax.f32 %v994_v28, 0.0  ;;  %v1027_v0 = vmax.f32 %v995_v52, 0.0  ;;  %1215 = vperm.xlu0 %1919, %v1097_v63   ;;  %1220 = vperm.xlu1 %1920, %v1098_v49  }
 0x18b   : > { %v1043_v29 = vpack.c.bf16 %v1027_v0, %v1025_v13  ;;  %v1042_v19 = vpack.c.bf16 %v1026_v32, %v1024_v53 }
 0x18d   : > { %1378 = vmatprep.subr.bf16.mxu0 %v1043_v29  ;;  %1225 = vperm.xlu0 %1919, %v1099_v56  }
 0x18e   : > { %1379 = vmatpush1.bf16.msra.mxu0 %v1042_v19  ;;  %1230 = vperm.xlu1 %1920, %v1100_v42  }
 0x191   : > { %1397 = vmatmul.mubr.bf16.vlgmr.msra.gmra.mrb[0].mxu0 %v1921_v12  ;;  %1235 = vperm.xlu0 %1919, %v1101_v54  }
 0x192   : > { %1406 = vmatprep.mubr.bf16.mxu0 %v2881_v61  ;;  %1240 = vperm.xlu1 %1920, %v1102_v27  }
 0x195   : > { %1245 = vperm.xlu0 %1919, %v1103_v34  }
 0x196   : > { %1250 = vperm.xlu1 %1920, %v1104_v43  }
 0x199   : > { %1407 = vmatmul.mubr.bf16.gmra.mrb[4].mxu0 %v1922_v31  ;;  %1255 = vperm.xlu0 %1919, %v1105_v8  }
 0x19a   : > { %1416 = vmatprep.mubr.bf16.mxu0 %v2881_v61  ;;  %1260 = vperm.xlu1 %1920, %v1106_v7  }
 0x19d   : > { %1265 = vperm.xlu0 %1919, %v1107_v1  }
 0x19e   : > { %1657 = vperm.xlu1 %1920, %v1654_v17  }
 0x1a1   : > { %1417 = vmatmul.mubr.bf16.gmra.mrb[8].mxu0 %v1923_v47 }
 0x1a2   : > { %1426 = vmatprep.mubr.bf16.mxu0 %v2881_v61 }
 0x1a9   : > { %1427 = vmatmul.mubr.bf16.gmra.mrb[12].mxu0 %v1924_v11 }
 0x1aa   : > { %1436 = vmatprep.mubr.bf16.mxu0 %v2881_v61  ;;  %v1116_v30 = vpop.permute.xlu1 %1115 }
 0x1ab   : > { %v1111_v35 = vpop.permute.xlu0 %1110 }
 0x1b1   : > { %1437 = vmatmul.mubr.bf16.gmra.mrb[16].mxu0 %v1925_v45 }
 0x1b2   : > { %1446 = vmatprep.mubr.bf16.mxu0 %v2881_v61 }
 0x1b9   : > { %1447 = vmatmul.mubr.bf16.gmra.mrb[20].mxu0 %v1926_v33  ;;  %v1126_v38 = vpop.permute.xlu0 %1125 }
 0x1ba   : > { %1456 = vmatprep.mubr.bf16.mxu0 %v2881_v61 }
 0x1bb   : > { %v1121_v21 = vpop.permute.xlu1 %1120 }
 0x1bd   : > { %v1136_v12 = vpop.permute.xlu0 %1135 }
 0x1bf   : > { %v1131_v4 = vpop.permute.xlu1 %1130 }
 0x1c1   : > { %1457 = vmatmul.mubr.bf16.gmra.mrb[24].mxu0 %v1927_v2  ;;  %v1146_v2 = vpop.permute.xlu0 %1145 }
 0x1c2   : > { %1466 = vmatprep.mubr.bf16.mxu0 %v2881_v61 }
 0x1c3   : > { %v1141_v1 = vpop.permute.xlu1 %1140 }
 0x1c9   : > { %1467 = vmatmul.mubr.bf16.gmra.mrb[28].mxu0 %v1928_v50 }
 0x1ca   : > { %1476 = vmatprep.mubr.bf16.mxu0 %v2881_v61 }
 0x1d1   : > { %1477 = vmatmul.mubr.bf16.gmra.mrb[32].mxu0 %v1929_v37 }
 0x1d2   : > { %1486 = vmatprep.mubr.bf16.mxu0 %v2881_v61 }
 0x1d9   : > { %1487 = vmatmul.mubr.bf16.gmra.mrb[36].mxu0 %v1930_v55 }
 0x1da   : > { %1496 = vmatprep.mubr.bf16.mxu0 %v2881_v61 }
 0x1e1   : > { %1497 = vmatmul.mubr.bf16.gmra.mrb[40].mxu0 %v1931_v6 }
 0x1e2   : > { %1506 = vmatprep.mubr.bf16.mxu0 %v2881_v61 }
 0x1e9   : > { %1507 = vmatmul.mubr.bf16.gmra.mrb[44].mxu0 %v1932_v15 }
 0x1ea   : > { %1516 = vmatprep.mubr.bf16.mxu0 %v2881_v61 }
 0x1f1   : > { %1517 = vmatmul.mubr.bf16.gmra.mrb[48].mxu0 %v1933_v46 }
 0x1f2   : > { %1526 = vmatprep.mubr.bf16.mxu0 %v2881_v61 }
 0x1f9   : > { %1527 = vmatmul.mubr.bf16.gmra.mrb[52].mxu0 %v1934_v39 }
 0x1fa   : > { %1536 = vmatprep.mubr.bf16.mxu0 %v2881_v61 }
 0x201   : > { %1537 = vmatmul.mubr.bf16.gmra.mrb[56].mxu0 %v1935_v51 }
 0x202   : > { %1546 = vmatprep.mubr.bf16.mxu0 %v2881_v61 }
 0x209   : > { %1547 = vmatmul.mubr.bf16.gmra.mrb[60].mxu0 %v1936_v9 }
 0x264   : > { %v1398_v44 = vpop.f32.mrb[0].mxu0 }
 0x265   : > { %v1399_v48 = vadd.f32 %v1398_v44, %v1111_v35  ;;  %v1400_v24 = vpop.f32.mrb[1].mxu0  ;;  %v1151_v44 = vpop.permute.xlu1 %1150 }
 0x266   : > { %v1401_v26 = vadd.f32 %v1400_v24, %v1111_v35  ;;  %v1402_v25 = vpop.f32.mrb[2].mxu0 }
 0x267   : > { %v1403_v36 = vadd.f32 %v1402_v25, %v1116_v30  ;;  %v1404_v16 = vpop.f32.mrb[3].mxu0  ;;  %v1557_v18 = vmax.f32 %v1399_v48, 0.0  ;;  %v1156_v25 = vpop.permute.xlu0 %1155 }
 0x268   : > { %v1405_v61 = vadd.f32 %v1404_v16, %v1116_v30  ;;  %v1558_v57 = vmax.f32 %v1401_v26, 0.0 }
 0x269   : > { %v1559_v20 = vmax.f32 %v1403_v36, 0.0 }
 0x26a   : > { %v1560_v40 = vmax.f32 %v1405_v61, 0.0 }
 0x26b   : > { %v1621_v3 = vpack.c.bf16 %v1559_v20, %v1557_v18 }
 0x26c   : > { %v1408_v22 = vpop.f32.mrb[4].mxu0  ;;  %v1622_v59 = vpack.c.bf16 %v1560_v40, %v1558_v57 }
 0x26d   : > { %v1409_v60 = vadd.f32 %v1408_v22, %v1121_v21  ;;  %v1410_v58 = vpop.f32.mrb[5].mxu0  ;;  %v1161_v22 = vpop.permute.xlu1 %1160 }
 0x26e   : > { %v1411_v23 = vadd.f32 %v1410_v58, %v1121_v21  ;;  %v1412_v41 = vpop.f32.mrb[6].mxu0  ;;  %1671 = vmatprep.subr.bf16.mxu1 %v1622_v59 }
 0x26f   : > { %v1413_v62 = vadd.f32 %v1412_v41, %v1126_v38  ;;  %v1414_v28 = vpop.f32.mrb[7].mxu0  ;;  %1672 = vmatpush1.bf16.msra.mxu1 %v1621_v3  ;;  %v1561_v32 = vmax.f32 %v1409_v60, 0.0 }
 0x270   : > { %v1415_v52 = vadd.f32 %v1414_v28, %v1126_v38  ;;  %v1562_v13 = vmax.f32 %v1411_v23, 0.0  ;;  %v1166_v23 = vpop.permute.xlu0 %1165 }
 0x271   : > { %v1563_v0 = vmax.f32 %v1413_v62, 0.0 }
 0x272   : > { %v1564_v53 = vmax.f32 %v1415_v52, 0.0 }
 0x273   : > { %v1623_v5 = vpack.c.bf16 %v1563_v0, %v1561_v32 }
 0x274   : > { %v1624_v29 = vpack.c.bf16 %v1564_v53, %v1562_v13  ;;  %v1418_v19 = vpop.f32.mrb[8].mxu0 }
 0x275   : > { %v1419_v63 = vadd.f32 %v1418_v19, %v1131_v4  ;;  %v1420_v49 = vpop.f32.mrb[9].mxu0 }
 0x276   : > { %v1421_v56 = vadd.f32 %v1420_v49, %v1131_v4  ;;  %v1422_v42 = vpop.f32.mrb[10].mxu0  ;;  %1673 = vmatprep.subr.bf16.mxu1 %v1624_v29  ;;  %v1171_v29 = vpop.permute.xlu1 %1170 }
 0x277   : > { %v1423_v54 = vadd.f32 %v1422_v42, %v1136_v12  ;;  %v1424_v27 = vpop.f32.mrb[11].mxu0  ;;  %1674 = vmatpush1.bf16.msra.mxu1 %v1623_v5  ;;  %v1565_v34 = vmax.f32 %v1419_v63, 0.0 }
 0x278   : > { %v1425_v31 = vadd.f32 %v1424_v27, %v1136_v12  ;;  %v1566_v8 = vmax.f32 %v1421_v56, 0.0  ;;  %v1176_v56 = vpop.permute.xlu0 %1175 }
 0x279   : > { %v1567_v43 = vmax.f32 %v1423_v54, 0.0 }
 0x27a   : > { %v1568_v7 = vmax.f32 %v1425_v31, 0.0 }
 0x27b   : > { %v1625_v47 = vpack.c.bf16 %v1567_v43, %v1565_v34 }
 0x27c   : > { %v1626_v17 = vpack.c.bf16 %v1568_v7, %v1566_v8  ;;  %v1428_v11 = vpop.f32.mrb[12].mxu0 }
 0x27d   : > { %v1429_v45 = vadd.f32 %v1428_v11, %v1141_v1  ;;  %v1430_v33 = vpop.f32.mrb[13].mxu0 }
 0x27e   : > { %v1431_v50 = vadd.f32 %v1430_v33, %v1141_v1  ;;  %v1432_v37 = vpop.f32.mrb[14].mxu0  ;;  %1675 = vmatprep.subr.bf16.mxu1 %v1626_v17  ;;  %v1181_v17 = vpop.permute.xlu1 %1180 }
 0x27f   : > { %v1433_v55 = vadd.f32 %v1432_v37, %v1146_v2  ;;  %v1434_v6 = vpop.f32.mrb[15].mxu0  ;;  %1676 = vmatpush1.bf16.msra.mxu1 %v1625_v47  ;;  %v1569_v46 = vmax.f32 %v1429_v45, 0.0 }
 0x280   : > { %v1435_v15 = vadd.f32 %v1434_v6, %v1146_v2  ;;  %v1570_v51 = vmax.f32 %v1431_v50, 0.0  ;;  %v1186_v50 = vpop.permute.xlu0 %1185 }
 0x281   : > { %v1571_v39 = vmax.f32 %v1433_v55, 0.0 }
 0x282   : > { %v1572_v9 = vmax.f32 %v1435_v15, 0.0 }
 0x283   : > { %v1627_v35 = vpack.c.bf16 %v1571_v39, %v1569_v46 }
 0x284   : > { %v1628_v48 = vpack.c.bf16 %v1572_v9, %v1570_v51  ;;  %v1438_v24 = vpop.f32.mrb[16].mxu0 }
 0x285   : > { %v1439_v30 = vadd.f32 %v1438_v24, %v1151_v44  ;;  %v1440_v26 = vpop.f32.mrb[17].mxu0 }
 0x286   : > { %v1441_v36 = vadd.f32 %v1440_v26, %v1151_v44  ;;  %v1442_v16 = vpop.f32.mrb[18].mxu0  ;;  %1677 = vmatprep.subr.bf16.mxu1 %v1628_v48  ;;  %v1191_v48 = vpop.permute.xlu1 %1190 }
 0x287   : > { %v1443_v61 = vadd.f32 %v1442_v16, %v1156_v25  ;;  %v1444_v14 = vpop.f32.mrb[19].mxu0  ;;  %1678 = vmatpush1.bf16.msra.mxu1 %v1627_v35  ;;  %v1573_v20 = vmax.f32 %v1439_v30, 0.0 }
 0x288   : > { %v1445_v18 = vadd.f32 %v1444_v14, %v1156_v25  ;;  %v1574_v40 = vmax.f32 %v1441_v36, 0.0  ;;  %v1196_v36 = vpop.permute.xlu0 %1195 }
 0x289   : > { %v1575_v57 = vmax.f32 %v1443_v61, 0.0 }
 0x28a   : > { %v1576_v3 = vmax.f32 %v1445_v18, 0.0 }
 0x28b   : > { %v1629_v21 = vpack.c.bf16 %v1575_v57, %v1573_v20 }
 0x28c   : > { %v1630_v59 = vpack.c.bf16 %v1576_v3, %v1574_v40  ;;  %v1448_v60 = vpop.f32.mrb[20].mxu0 }
 0x28d   : > { %v1449_v58 = vadd.f32 %v1448_v60, %v1161_v22  ;;  %v1450_v38 = vpop.f32.mrb[21].mxu0 }
 0x28e   : > { %v1451_v41 = vadd.f32 %v1450_v38, %v1161_v22  ;;  %v1452_v62 = vpop.f32.mrb[22].mxu0  ;;  %1679 = vmatprep.subr.bf16.mxu1 %v1630_v59  ;;  %v1201_v59 = vpop.permute.xlu1 %1200 }
 0x28f   : > { %v1453_v28 = vadd.f32 %v1452_v62, %v1166_v23  ;;  %v1454_v52 = vpop.f32.mrb[23].mxu0  ;;  %1680 = vmatpush1.bf16.msra.mxu1 %v1629_v21  ;;  %v1577_v0 = vmax.f32 %v1449_v58, 0.0 }
 0x290   : > { %v1455_v32 = vadd.f32 %v1454_v52, %v1166_v23  ;;  %v1578_v53 = vmax.f32 %v1451_v41, 0.0  ;;  %v1206_v41 = vpop.permute.xlu0 %1205 }
 0x291   : > { %v1579_v13 = vmax.f32 %v1453_v28, 0.0 }
 0x292   : > { %v1580_v5 = vmax.f32 %v1455_v32, 0.0 }
 0x293   : > { %v1631_v4 = vpack.c.bf16 %v1579_v13, %v1577_v0 }
 0x294   : > { %v1632_v19 = vpack.c.bf16 %v1580_v5, %v1578_v53  ;;  %v1458_v63 = vpop.f32.mrb[24].mxu0 }
 0x295   : > { %v1459_v49 = vadd.f32 %v1458_v63, %v1171_v29  ;;  %v1460_v12 = vpop.f32.mrb[25].mxu0 }
 0x296   : > { %v1461_v42 = vadd.f32 %v1460_v12, %v1171_v29  ;;  %v1462_v54 = vpop.f32.mrb[26].mxu0  ;;  %1681 = vmatprep.subr.bf16.mxu1 %v1632_v19  ;;  %v1211_v19 = vpop.permute.xlu1 %1210 }
 0x297   : > { %v1463_v27 = vadd.f32 %v1462_v54, %v1176_v56  ;;  %v1464_v31 = vpop.f32.mrb[27].mxu0  ;;  %1682 = vmatpush1.bf16.msra.mxu1 %v1631_v4  ;;  %v1581_v43 = vmax.f32 %v1459_v49, 0.0 }
 0x298   : > { %v1465_v34 = vadd.f32 %v1464_v31, %v1176_v56  ;;  %v1582_v7 = vmax.f32 %v1461_v42, 0.0  ;;  %v1216_v42 = vpop.permute.xlu0 %1215 }
 0x299   : > { %v1583_v8 = vmax.f32 %v1463_v27, 0.0 }
 0x29a   : > { %v1584_v47 = vmax.f32 %v1465_v34, 0.0 }
 0x29b   : > { %v1633_v1 = vpack.c.bf16 %v1583_v8, %v1581_v43 }
 0x29c   : > { %v1634_v11 = vpack.c.bf16 %v1584_v47, %v1582_v7  ;;  %v1468_v45 = vpop.f32.mrb[28].mxu0 }
 0x29d   : > { %v1469_v33 = vadd.f32 %v1468_v45, %v1181_v17  ;;  %v1470_v2 = vpop.f32.mrb[29].mxu0 }
 0x29e   : > { %v1471_v37 = vadd.f32 %v1470_v2, %v1181_v17  ;;  %v1472_v55 = vpop.f32.mrb[30].mxu0  ;;  %1683 = vmatprep.subr.bf16.mxu1 %v1634_v11  ;;  %v1221_v11 = vpop.permute.xlu1 %1220 }
 0x29f   : > { %v1473_v6 = vadd.f32 %v1472_v55, %v1186_v50  ;;  %v1474_v15 = vpop.f32.mrb[31].mxu0  ;;  %1684 = vmatpush1.bf16.msra.mxu1 %v1633_v1  ;;  %v1585_v39 = vmax.f32 %v1469_v33, 0.0 }
 0x2a0   : > { %v1475_v46 = vadd.f32 %v1474_v15, %v1186_v50  ;;  %v1586_v9 = vmax.f32 %v1471_v37, 0.0  ;;  %v1226_v37 = vpop.permute.xlu0 %1225 }
 0x2a1   : > { %v1587_v51 = vmax.f32 %v1473_v6, 0.0 }
 0x2a2   : > { %v1588_v35 = vmax.f32 %v1475_v46, 0.0 }
 0x2a3   : > { %v1635_v44 = vpack.c.bf16 %v1587_v51, %v1585_v39 }
 0x2a4   : > { %v1636_v24 = vpack.c.bf16 %v1588_v35, %v1586_v9  ;;  %v1478_v30 = vpop.f32.mrb[32].mxu0 }
 0x2a5   : > { %v1479_v26 = vadd.f32 %v1478_v30, %v1191_v48  ;;  %v1480_v25 = vpop.f32.mrb[33].mxu0 }
 0x2a6   : > { %v1481_v16 = vadd.f32 %v1480_v25, %v1191_v48  ;;  %v1482_v61 = vpop.f32.mrb[34].mxu0  ;;  %1685 = vmatprep.subr.bf16.mxu1 %v1636_v24  ;;  %v1231_v24 = vpop.permute.xlu1 %1230 }
 0x2a7   : > { %v1483_v14 = vadd.f32 %v1482_v61, %v1196_v36  ;;  %v1484_v18 = vpop.f32.mrb[35].mxu0  ;;  %1686 = vmatpush1.bf16.msra.mxu1 %v1635_v44  ;;  %v1589_v57 = vmax.f32 %v1479_v26, 0.0 }
 0x2a8   : > { %v1485_v20 = vadd.f32 %v1484_v18, %v1196_v36  ;;  %v1590_v3 = vmax.f32 %v1481_v16, 0.0  ;;  %v1236_v16 = vpop.permute.xlu0 %1235 }
 0x2a9   : > { %v1591_v40 = vmax.f32 %v1483_v14, 0.0 }
 0x2aa   : > { %v1592_v21 = vmax.f32 %v1485_v20, 0.0 }
 0x2ab   : > { %v1637_v22 = vpack.c.bf16 %v1591_v40, %v1589_v57 }
 0x2ac   : > { %v1638_v60 = vpack.c.bf16 %v1592_v21, %v1590_v3  ;;  %v1488_v58 = vpop.f32.mrb[36].mxu0 }
 0x2ad   : > { %v1489_v38 = vadd.f32 %v1488_v58, %v1201_v59  ;;  %v1490_v23 = vpop.f32.mrb[37].mxu0 }
 0x2ae   : > { %v1491_v62 = vadd.f32 %v1490_v23, %v1201_v59  ;;  %v1492_v28 = vpop.f32.mrb[38].mxu0  ;;  %1687 = vmatprep.subr.bf16.mxu1 %v1638_v60  ;;  %v1241_v60 = vpop.permute.xlu1 %1240 }
 0x2af   : > { %v1493_v52 = vadd.f32 %v1492_v28, %v1206_v41  ;;  %v1494_v32 = vpop.f32.mrb[39].mxu0  ;;  %1688 = vmatpush1.bf16.msra.mxu1 %v1637_v22  ;;  %v1593_v13 = vmax.f32 %v1489_v38, 0.0 }
 0x2b0   : > { %v1495_v0 = vadd.f32 %v1494_v32, %v1206_v41  ;;  %v1594_v5 = vmax.f32 %v1491_v62, 0.0  ;;  %v1246_v62 = vpop.permute.xlu0 %1245 }
 0x2b1   : > { %v1595_v53 = vmax.f32 %v1493_v52, 0.0 }
 0x2b2   : > { %v1596_v4 = vmax.f32 %v1495_v0, 0.0 }
 0x2b3   : > { %v1639_v29 = vpack.c.bf16 %v1595_v53, %v1593_v13 }
 0x2b4   : > { %v1640_v63 = vpack.c.bf16 %v1596_v4, %v1594_v5  ;;  %v1498_v49 = vpop.f32.mrb[40].mxu0 }
 0x2b5   : > { %v1499_v12 = vadd.f32 %v1498_v49, %v1211_v19  ;;  %v1500_v56 = vpop.f32.mrb[41].mxu0 }
 0x2b6   : > { %v1501_v54 = vadd.f32 %v1500_v56, %v1211_v19  ;;  %v1502_v27 = vpop.f32.mrb[42].mxu0  ;;  %1689 = vmatprep.subr.bf16.mxu1 %v1640_v63  ;;  %v1251_v63 = vpop.permute.xlu1 %1250 }
 0x2b7   : > { %v1503_v31 = vadd.f32 %v1502_v27, %v1216_v42  ;;  %v1504_v34 = vpop.f32.mrb[43].mxu0  ;;  %1690 = vmatpush1.bf16.msra.mxu1 %v1639_v29  ;;  %v1597_v8 = vmax.f32 %v1499_v12, 0.0 }
 0x2b8   : > { %v1505_v43 = vadd.f32 %v1504_v34, %v1216_v42  ;;  %v1598_v47 = vmax.f32 %v1501_v54, 0.0  ;;  %v1256_v54 = vpop.permute.xlu0 %1255 }
 0x2b9   : > { %v1599_v7 = vmax.f32 %v1503_v31, 0.0 }
 0x2ba   : > { %v1600_v1 = vmax.f32 %v1505_v43, 0.0 }
 0x2bb   : > { %v1641_v17 = vpack.c.bf16 %v1599_v7, %v1597_v8 }
 0x2bc   : > { %v1642_v45 = vpack.c.bf16 %v1600_v1, %v1598_v47  ;;  %v1508_v33 = vpop.f32.mrb[44].mxu0 }
 0x2bd   : > { %v1509_v2 = vadd.f32 %v1508_v33, %v1221_v11  ;;  %v1510_v50 = vpop.f32.mrb[45].mxu0 }
 0x2be   : > { %v1511_v55 = vadd.f32 %v1510_v50, %v1221_v11  ;;  %v1512_v6 = vpop.f32.mrb[46].mxu0  ;;  %1691 = vmatprep.subr.bf16.mxu1 %v1642_v45  ;;  %v1261_v45 = vpop.permute.xlu1 %1260 }
 0x2bf   : > { %v1513_v15 = vadd.f32 %v1512_v6, %v1226_v37  ;;  %v1514_v46 = vpop.f32.mrb[47].mxu0  ;;  %1692 = vmatpush1.bf16.msra.mxu1 %v1641_v17  ;;  %v1601_v51 = vmax.f32 %v1509_v2, 0.0 }
 0x2c0   : > { %v1515_v39 = vadd.f32 %v1514_v46, %v1226_v37  ;;  %v1602_v35 = vmax.f32 %v1511_v55, 0.0  ;;  %v1266_v55 = vpop.permute.xlu0 %1265 }
 0x2c1   : > { %v1603_v9 = vmax.f32 %v1513_v15, 0.0 }
 0x2c2   : > { %v1604_v44 = vmax.f32 %v1515_v39, 0.0 }
 0x2c3   : > { %v1643_v48 = vpack.c.bf16 %v1603_v9, %v1601_v51 }
 0x2c4   : > { %v1644_v30 = vpack.c.bf16 %v1604_v44, %v1602_v35  ;;  %v1518_v26 = vpop.f32.mrb[48].mxu0 }
 0x2c5   : > { %v1519_v25 = vadd.f32 %v1518_v26, %v1231_v24  ;;  %v1520_v36 = vpop.f32.mrb[49].mxu0  ;;  %v1658_v26 = vpop.permute.xlu1 %1657 }
 0x2c6   : > { %v1521_v61 = vadd.f32 %v1520_v36, %v1231_v24  ;;  %v1522_v14 = vpop.f32.mrb[50].mxu0  ;;  %1693 = vmatprep.subr.bf16.mxu1 %v1644_v30 }
 0x2c7   : > { %v1523_v18 = vadd.f32 %v1522_v14, %v1236_v16  ;;  %v1524_v20 = vpop.f32.mrb[51].mxu0  ;;  %1694 = vmatpush1.bf16.msra.mxu1 %v1643_v48  ;;  %v1605_v40 = vmax.f32 %v1519_v25, 0.0 }
 0x2c8   : > { %v1525_v57 = vadd.f32 %v1524_v20, %v1236_v16  ;;  %v1606_v21 = vmax.f32 %v1521_v61, 0.0 }
 0x2c9   : > { %v1607_v3 = vmax.f32 %v1523_v18, 0.0 }
 0x2ca   : > { %v1608_v22 = vmax.f32 %v1525_v57, 0.0 }
 0x2cb   : > { %v1645_v59 = vpack.c.bf16 %v1607_v3, %v1605_v40 }
 0x2cc   : > { %v1646_v58 = vpack.c.bf16 %v1608_v22, %v1606_v21  ;;  %v1528_v38 = vpop.f32.mrb[52].mxu0 }
 0x2cd   : > { %v1529_v23 = vadd.f32 %v1528_v38, %v1241_v60  ;;  %v1530_v41 = vpop.f32.mrb[53].mxu0 }
 0x2ce   : > { %v1531_v28 = vadd.f32 %v1530_v41, %v1241_v60  ;;  %v1532_v52 = vpop.f32.mrb[54].mxu0  ;;  %1695 = vmatprep.subr.bf16.mxu1 %v1646_v58 }
 0x2cf   : > { %v1533_v32 = vadd.f32 %v1532_v52, %v1246_v62  ;;  %v1534_v0 = vpop.f32.mrb[55].mxu0  ;;  %1696 = vmatpush1.bf16.msra.mxu1 %v1645_v59  ;;  %v1609_v53 = vmax.f32 %v1529_v23, 0.0 }
 0x2d0   : > { %v1535_v13 = vadd.f32 %v1534_v0, %v1246_v62  ;;  %v1610_v4 = vmax.f32 %v1531_v28, 0.0 }
 0x2d1   : > { %v1611_v5 = vmax.f32 %v1533_v32, 0.0 }
 0x2d2   : > { %v1612_v29 = vmax.f32 %v1535_v13, 0.0 }
 0x2d3   : > { %v1647_v19 = vpack.c.bf16 %v1611_v5, %v1609_v53 }
 0x2d4   : > { %v1648_v49 = vpack.c.bf16 %v1612_v29, %v1610_v4  ;;  %v1538_v12 = vpop.f32.mrb[56].mxu0 }
 0x2d5   : > { %v1539_v56 = vadd.f32 %v1538_v12, %v1251_v63  ;;  %v1540_v42 = vpop.f32.mrb[57].mxu0 }
 0x2d6   : > { %v1541_v27 = vadd.f32 %v1540_v42, %v1251_v63  ;;  %v1542_v31 = vpop.f32.mrb[58].mxu0  ;;  %1697 = vmatprep.subr.bf16.mxu1 %v1648_v49 }
 0x2d7   : > { %v1543_v34 = vadd.f32 %v1542_v31, %v1256_v54  ;;  %v1544_v43 = vpop.f32.mrb[59].mxu0  ;;  %1698 = vmatpush1.bf16.msra.mxu1 %v1647_v19  ;;  %v1613_v7 = vmax.f32 %v1539_v56, 0.0 }
 0x2d8   : > { %v1545_v8 = vadd.f32 %v1544_v43, %v1256_v54  ;;  %v1614_v1 = vmax.f32 %v1541_v27, 0.0 }
 0x2d9   : > { %v1615_v47 = vmax.f32 %v1543_v34, 0.0 }
 0x2da   : > { %v1616_v17 = vmax.f32 %v1545_v8, 0.0 }
 0x2db   : > { %v1649_v11 = vpack.c.bf16 %v1615_v47, %v1613_v7 }
 0x2dc   : > { %v1650_v33 = vpack.c.bf16 %v1616_v17, %v1614_v1  ;;  %v1548_v2 = vpop.f32.mrb[60].mxu0 }
 0x2dd   : > { %v1549_v50 = vadd.f32 %v1548_v2, %v1261_v45  ;;  %v1550_v37 = vpop.f32.mrb[61].mxu0 }
 0x2de   : > { %v1551_v6 = vadd.f32 %v1550_v37, %v1261_v45  ;;  %v1552_v15 = vpop.f32.mrb[62].mxu0  ;;  %1699 = vmatprep.subr.bf16.mxu1 %v1650_v33 }
 0x2df   : > { %v1553_v46 = vadd.f32 %v1552_v15, %v1266_v55  ;;  %v1554_v39 = vpop.f32.mrb[63].mxu0  ;;  %1700 = vmatpush1.bf16.msra.mxu1 %v1649_v11  ;;  %v1617_v9 = vmax.f32 %v1549_v50, 0.0 }
 0x2e0   : > { %v1555_v51 = vadd.f32 %v1554_v39, %v1266_v55  ;;  %v1618_v44 = vmax.f32 %v1551_v6, 0.0 }
 0x2e1   : > { %v1619_v35 = vmax.f32 %v1553_v46, 0.0 }
 0x2e2   : > { %v1620_v48 = vmax.f32 %v1555_v51, 0.0 }
 0x2e3   : > { %v1651_v24 = vpack.c.bf16 %v1619_v35, %v1617_v9 }
 0x2e4   : > { %v1652_v30 = vpack.c.bf16 %v1620_v48, %v1618_v44 }
 0x2e6   : > { %1701 = vmatprep.subr.bf16.mxu1 %v1652_v30 }
 0x2e7   : > { %1702 = vmatpush1.bf16.msra.mxu1 %v1651_v24 }
 0x2ea   : > { %1704 = vmatmul.mubr.bf16.vlgmr.msra.gmra.mrb[0].mxu1 %v2795_v10 }
 0x3bd   : > { %v1705_v25 = vpop.f32.mrb[0].mxu1  ;;  %1724 = sbr.rel (!%p2084_p5) target bundleno = 991 (0x3df), region = 52 }
 0x3be   : > { %v1706_v36 = vadd.f32 %v1705_v25, %v1658_v26  ;;  %v1707_v16 = vpop.f32.mrb[1].mxu1 }
 0x3bf   : > { %v1708_v61 = vadd.f32 %v1707_v16, %v1658_v26  ;;  %v1709_v14 = vpop.f32.mrb[2].mxu1 }
 0x3c0   : > { %v1710_v18 = vpop.f32.mrb[3].mxu1 }
 0x3c1   : > { %v1714_v20 = vcombine.low %v1706_v36, %v1708_v61 }
 0x3c3   : > { %1716 = vst [vmem:[%s284_s8] sm:$0xff] %v1714_v20 }
 0x3c4   : > { %s2893_s13 = smov (!%p1727_p11, %s1726_s13), 2 }
 0x3c5   : > { %s2806_s14 = sshll.u32 %s2893_s13, 6 }
 0x3c6   : > { %s1731_s15 = ssub.s32 128, %s2806_s14 }
 0x3c7   : > { %1732 = vsyncadd %s2801_s9, %s1731_s15  ;;  %p1827_p12 = scmp.ne.s32.totalorder %s2806_s14, 0  ;;  %s1833_s16 = sshll.u32 %s2067_s28, 7 }
 0x3c8   : > { %s2815_s11 = scalar_lea.hbm %s2862_s7, %s1833_s16  ;;  %s1738_s20 = sshll.u32 %s284_s8, 4  ;;  %s1739_s20 = int_to_ptr.vmem [resolvable:$true] %s1738_s20 }
 0x3c9   : > { %s1937_s17 = scalar_lea.vmem %s1739_s20, %s2806_s14  ;;  %s2005_s21 = smov [#allocation2]  }
 0x3ca   : > { %p1938_p13 = scmp.ne.s32.totalorder %s1739_s20, %s1937_s17  ;;  %s1941_s22 = sshll.u32 %s2005_s21, 4  ;;  %s1942_s22 = int_to_ptr.vmem [resolvable:$false] %s1941_s22 }
 0x3cb   : > { %s1943_s23 = scalar_lea.vmem %s1942_s22, 256  ;;  %p1944_p2 = scmp.lt.s32.totalorder %s1739_s20, %s1942_s22 }
 0x3cc   : > { %p1939_p0 = pnand %p1938_p13, %p1827_p12  ;;  %p1945_p3 = scmp.lt.s32.totalorder %s1943_s23, %s1937_s17 }
 0x3ce   : > { %p1940_p1 = pneg %p1939_p0  ;;  %p1946_p4 = por %p1945_p3, %p1944_p2 }
 0x3d0   : > { %p1947_p5 = pnand %p1946_p4, %p1940_p1 }
 0x3d2   : > { %1950 = shalt.err (!%p1947_p5)
}
 0x3d3   : > { %s1951_s28 = scalar_lea.hbm %s2815_s11, %s2806_s14  ;;  %s1955_s13 = scalar_lea.hbm %s2862_s7, 192 }
 0x3d4   : > { %p1952_p7 = scmp.ne.s32.totalorder %s2815_s11, %s1951_s28  ;;  %p1956_p10 = scmp.lt.u32.totalorder %s2815_s11, %s2862_s7 }
 0x3d5   : > { %p1957_p11 = scmp.lt.u32.totalorder %s1955_s13, %s1951_s28  ;;  %p1959_p0 = scmp.lt.u32.totalorder %s1951_s28, %s2815_s11 }
 0x3d6   : > { %p1953_p8 = pnand %p1952_p7, %p1827_p12 }
 0x3d7   : > { %p1958_p13 = por %p1957_p11, %p1956_p10 }
 0x3d8   : > { %p1954_p9 = pneg %p1953_p8 }
 0x3d9   : > { %p1960_p1 = por %p1959_p0, %p1958_p13 }
 0x3db   : > { %p1961_p2 = pnand %p1960_p1, %p1954_p9 }
 0x3dd   : > { %1964 = shalt.err (!%p1961_p2)
}
 0x3de   : > { %1741 = dma.vmem_to_hbm [thread:$0]  (%p1827_p12), %s1739_s20, %s2806_s14, %s2815_s11, %s2801_s9  }
 0x3df PF: > { %p1839_p3 = scmp.ge.s32.totalorder %s1999_s27, 2  ;;  %s1750_s18 = sand.u32 1, %s1987_s24  }
 0x3e0   : > { %s1751_s19 = scalar_lea.sflag [#allocation3], %s1750_s18 }
 0x3e1   : > { %p1836_p4 = pnand %p1839_p3, %p2088_p6 }
 0x3e3   : > { %1982 = dma.done.wait (!%p1836_p4), %s1751_s19, 128  }
 0x3e4   : > { %1984 = vsyncadd (!%p1836_p4), %s1751_s19, 4294967168  ;;  %p17_p5 = scmp.ge.s32.totalorder %s2071_s30, 4   ;;  %s2888_s24 = smov %s1991_s25 }
 0x3e5   : > { %s2889_s25 = smov %s1995_s26  ;;  %s2890_s26 = smov %s2082_s10 }
 0x3e6   : > { %s2891_s27 = smov %s2071_s30  ;;  %19 = sbr.rel (!%p17_p5) target bundleno = 3 (0x3), region = 86 }
 0x3ed   :  { %1756 = vsyncpa [#allocation3], 1 }
 0x3ee   :  { %1758 = vsyncpa [#allocation3 + $0x1], 1 }

</bundles_post_ra>
